<compile_context>
chip_gen: v5e
topology: v5e:2x2
jax: 0.10.0
libtpu: 0.0.40
codegen_flags: <defaults>
</compile_context>

<pallas_src>
import functools

import jax
import jax.numpy as jnp
from jax.experimental import pallas as pl
from jax.experimental.pallas import tpu as pltpu

_LANE = 128
_MUL = 4  # BottleNeck expansion


def _round_up(x, m):
    return ((x + m - 1) // m) * m


# -----------------------------------------------------------------------------
# Kernel 1: fused (x @ W) + bias [+ residual] [+ ReLU]   -- used for 1x1 convs
# -----------------------------------------------------------------------------
def _make_matmul_kernel(has_residual, relu):
    def kernel(x_ref, w_ref, b_ref, *rest):
        if has_residual:
            r_ref, o_ref = rest
        else:
            (o_ref,) = rest
        acc = jnp.dot(x_ref[...], w_ref[...], preferred_element_type=jnp.float32)
        out = acc + b_ref[...]                       # folded-BN bias (f32)
        if has_residual:
            out = out + r_ref[...].astype(jnp.float32)
        if relu:
            out = jnp.maximum(out, 0.0)
        o_ref[...] = out.astype(o_ref.dtype)

    return kernel


def matmul_bias_act(x_flat, w, bias, *, relu, residual=None,
                    out_dtype=jnp.bfloat16, tm=512):
    """x_flat: (M, K) bf16.  w: (K, Cp) bf16 (BN scale folded).  bias: (Cp,) f32."""
    m, k = x_flat.shape
    kw, cp = w.shape
    assert k == kw and cp % _LANE == 0

    # M tile: single full-M step when M is small, else 512-row tiles
    # (memory-bound layers: bigger tiles -> much closer to HBM roofline).
    tm_e = m if m <= 2 * tm else tm
    gm = pl.cdiv(m, tm_e)

    # Cout tile: one resident weight tile when Cout <= 512; otherwise 256-wide
    # tiles (fills the 256-wide MXU N dim on v6e/v7x; 128 only as last resort).
    if cp <= 512:
        tn_e = cp
    elif cp % 256 == 0:
        tn_e = 256
    else:
        tn_e = _LANE
    gn = cp // tn_e

    # Grid ordering: the operand whose block index varies on the inner (fast)
    # grid axis is re-fetched once per outer step.  Pick the order that
    # minimizes total re-fetch HBM traffic (weights vs activations).
    w_bytes = k * cp * jnp.dtype(w.dtype).itemsize
    x_bytes = m * k * jnp.dtype(x_flat.dtype).itemsize
    m_outer = (gm - 1) * w_bytes <= (gn - 1) * x_bytes

    if m_outer:
        grid = (gm, gn)
        xmap = lambda i, j: (i, 0)
        wmap = lambda i, j: (0, j)
        omap = lambda i, j: (i, j)
    else:
        grid = (gn, gm)
        xmap = lambda j, i: (i, 0)
        wmap = lambda j, i: (0, j)
        omap = lambda j, i: (i, j)

    in_specs = [
        pl.BlockSpec((tm_e, k), xmap),     # activation tile
        pl.BlockSpec((k, tn_e), wmap),     # weight column tile
        pl.BlockSpec((1, tn_e), wmap),     # bias tile
    ]
    args = [x_flat, w, bias.reshape(1, cp)]

    has_residual = residual is not None
    if has_residual:
        in_specs.append(pl.BlockSpec((tm_e, tn_e), omap))
        args.append(residual)

    return pl.pallas_call(
        _make_matmul_kernel(has_residual, relu),
        out_shape=jax.ShapeDtypeStruct((m, cp), out_dtype),
        grid=grid,
        in_specs=in_specs,
        out_specs=pl.BlockSpec((tm_e, tn_e), omap),
        compiler_params=pltpu.CompilerParams(
            dimension_semantics=("parallel", "parallel")),
    )(*args)


# -----------------------------------------------------------------------------
# Kernel 2: implicit-GEMM 3x3 conv (stride 1, pad 1) + bias + ReLU
# -----------------------------------------------------------------------------
def _conv3x3_kernel(x_ref, w_ref, b_ref, o_ref):
    # x_ref: (nb, Hp, Wp, Cin)   spatially-padded image(s), resident per batch tile
    # w_ref: (3, 3*Cin, Coutp)   per-row-tap weights; the 3 column taps are
    #                            concatenated into K.  BN scale folded, bf16.
    # b_ref: (1, Coutp) f32
    # o_ref: (nb, th*Wo, Coutp)  flat, lane-dense output block
    nb, m_blk, coutp = o_ref.shape
    wp = x_ref.shape[2]
    cin = x_ref.shape[3]
    wo = wp - 2
    th = m_blk // wo
    r = pl.program_id(1)
    row0 = r * th

    # Build the 3 column-shifted windows ONCE (the only sublane-unaligned
    # slices), concatenated along channels -> one K = 3*Cin contraction per
    # row tap.  Row-tap selection below is a cheap leading-dim slice.
    rows = x_ref[:, pl.ds(row0, th + 2), :, :]                     # (nb, th+2, Wp, Cin)
    win = jnp.concatenate(
        [rows[:, :, 0:wo, :], rows[:, :, 1:1 + wo, :], rows[:, :, 2:2 + wo, :]],
        axis=-1)                                                    # (nb, th+2, Wo, 3*Cin)

    # Accumulator starts at the broadcast bias (saves one full f32 add pass).
    acc = jnp.broadcast_to(b_ref[...].astype(jnp.float32), (nb * m_blk, coutp))
    for di in range(3):                                             # unrolled row taps
        xi = win[:, di:di + th, :, :].reshape(nb * m_blk, 3 * cin)
        acc = acc + jnp.dot(xi, w_ref[di], preferred_element_type=jnp.float32)

    o_ref[...] = jnp.maximum(acc, 0.0).reshape(nb, m_blk, coutp).astype(o_ref.dtype)


def _pick_tiles(n, h, w, target=512):
    """Choose (nb, th).  Large images: nb=1, smallest row-tile divisor of h with
    th*w >= target matmul rows (and a sublane-friendly th*w).  Small images
    (late ResNet stages / tests): process nb whole images per step to fill M."""
    if h * w >= target:
        th = h
        for cand in range(1, h + 1):
            if h % cand == 0 and cand * w >= target and (cand * w) % 8 == 0:
                th = cand
                break
        return 1, th
    nb = 1
    for cand in range(1, n + 1):
        if n % cand == 0 and cand * h * w <= 2 * target:
            nb = cand
    return nb, h


def conv3x3_bias_relu(x_nhwc, w_taps, bias):
    """x_nhwc: (N, H, W, Cin_p) bf16.  Returns flat (N, H*W, Cout_p) bf16."""
    n, h, w, cin = x_nhwc.shape
    coutp = w_taps.shape[2]
    nb, th = _pick_tiles(n, h, w)

    # Spatial halo pad only (channels already lane-padded).
    # TODO(synk): fold this pad into conv1's output write (extra HBM pass).
    xp = jnp.pad(x_nhwc, ((0, 0), (1, 1), (1, 1), (0, 0)))
    hp, wp = h + 2, w + 2

    return pl.pallas_call(
        _conv3x3_kernel,
        out_shape=jax.ShapeDtypeStruct((n, h * w, coutp), jnp.bfloat16),
        grid=(n // nb, h // th),
        in_specs=[
            pl.BlockSpec((nb, hp, wp, cin), lambda i, r: (i, 0, 0, 0)),   # resident image(s)
            pl.BlockSpec((3, 3 * cin, coutp), lambda i, r: (0, 0, 0)),    # weights (invariant)
            pl.BlockSpec((1, coutp), lambda i, r: (0, 0)),                # bias (invariant)
        ],
        out_specs=pl.BlockSpec((nb, th * w, coutp), lambda i, r: (i, r, 0)),
        compiler_params=pltpu.CompilerParams(
            dimension_semantics=("parallel", "parallel"),
            vmem_limit_bytes=32 * 1024 * 1024),   # safe on v5e/v6e/v7x scoped limits
    )(xp, w_taps, bias.reshape(1, coutp))


# -----------------------------------------------------------------------------
# Parameter construction (deterministic, synthetic) + BN folding / packing
# -----------------------------------------------------------------------------
def _fold_bn(gamma, beta, mean, var, eps=1e-5):
    scale = gamma / jnp.sqrt(var + eps)
    bias = beta - mean * scale
    return scale, bias


def _rand_bn(key, c):
    k1, k2, k3, k4 = jax.random.split(key, 4)
    gamma = 1.0 + 0.1 * jax.random.normal(k1, (c,), jnp.float32)
    beta = 0.1 * jax.random.normal(k2, (c,), jnp.float32)
    mean = 0.1 * jax.random.normal(k3, (c,), jnp.float32)
    var = jnp.abs(jax.random.normal(k4, (c,), jnp.float32)) + 0.5
    return gamma, beta, mean, var


def _pack_1x1(w_oihw, scale, cin_p, cout_p):
    # PyTorch (Cout, Cin, 1, 1) -> (Cin_p, Cout_p), BN scale folded, bf16.
    cout, cin = w_oihw.shape[:2]
    wm = jnp.transpose(w_oihw[:, :, 0, 0], (1, 0)) * scale[None, :]
    wm = jnp.pad(wm, ((0, cin_p - cin), (0, cout_p - cout)))
    return wm.astype(jnp.bfloat16)


def _pack_3x3(w_oihw, scale, cin_p, cout_p):
    # PyTorch (Cout, Cin, 3, 3) -> (3, 3*Cin_p, Cout_p): row-tap major, column
    # taps concatenated into K (matches the kernel's channel-concat order).
    cout, cin = w_oihw.shape[:2]
    wt = jnp.transpose(w_oihw, (2, 3, 1, 0)) * scale[None, None, None, :]   # (3,3,Cin,Cout)
    wt = jnp.pad(wt, ((0, 0), (0, 0), (0, cin_p - cin), (0, cout_p - cout)))
    return wt.reshape(3, 3 * cin_p, cout_p).astype(jnp.bfloat16)


def _pack_bias(bias, cout_p):
    return jnp.pad(bias, (0, cout_p - bias.shape[0])).astype(jnp.float32)


def make_bottleneck_params(key, in_planes, out_planes, stride):
    cin, cmid, cout = in_planes, out_planes, out_planes * _MUL
    cin_p, cmid_p, cout_p = (_round_up(c, _LANE) for c in (cin, cmid, cout))
    ks = jax.random.split(key, 8)

    w1 = 0.1 * jax.random.normal(ks[0], (cmid, cin, 1, 1), jnp.float32)
    w2 = 0.1 * jax.random.normal(ks[1], (cmid, cmid, 3, 3), jnp.float32)
    w3 = 0.1 * jax.random.normal(ks[2], (cout, cmid, 1, 1), jnp.float32)
    s1, b1 = _fold_bn(*_rand_bn(ks[3], cmid))
    s2, b2 = _fold_bn(*_rand_bn(ks[4], cmid))
    s3, b3 = _fold_bn(*_rand_bn(ks[5], cout))

    p = {
        "w1": _pack_1x1(w1, s1, cin_p, cmid_p), "b1": _pack_bias(b1, cmid_p),
        "w2": _pack_3x3(w2, s2, cmid_p, cmid_p), "b2": _pack_bias(b2, cmid_p),
        "w3": _pack_1x1(w3, s3, cmid_p, cout_p), "b3": _pack_bias(b3, cout_p),
    }
    # Projection shortcut iff stride != 1 OR in_planes != out_planes * 4.
    if stride != 1 or cin != cout:
        wsc = 0.1 * jax.random.normal(ks[6], (cout, cin, 1, 1), jnp.float32)
        ssc, bsc = _fold_bn(*_rand_bn(ks[7], cout))
        p["wsc"] = _pack_1x1(wsc, ssc, cin_p, cout_p)
        p["bsc"] = _pack_bias(bsc, cout_p)
    return p


# -----------------------------------------------------------------------------
# BottleNeck forward (NCHW in / NCHW out, matching the PyTorch module)
# -----------------------------------------------------------------------------
@functools.partial(jax.jit, static_argnames=("out_planes", "stride"))
def bottleneck_forward(x_nchw, params, out_planes, stride):
    cout = out_planes * _MUL
    x = jnp.transpose(x_nchw, (0, 2, 3, 1))                 # NCHW -> NHWC
    n, h, w, cin = x.shape
    cin_p = params["w1"].shape[0]
    cmid_p = params["w1"].shape[1]
    cout_p = params["w3"].shape[1]

    xb = x.astype(jnp.bfloat16)
    if cin_p != cin:
        xb = jnp.pad(xb, ((0, 0), (0, 0), (0, 0), (0, cin_p - cin)))

    # A 1x1 conv with stride s == spatial subsample then channel matmul
    # (the reference puts the stride on conv1 and on the shortcut conv).
    xs = xb[:, ::stride, ::stride, :] if stride != 1 else xb
    ho, wo = xs.shape[1], xs.shape[2]
    xs_flat = xs.reshape(n * ho * wo, cin_p)

    # conv1 (1x1, stride) -> bn1 -> relu
    h1 = matmul_bias_act(xs_flat, params["w1"], params["b1"], relu=True)
    h1 = h1.reshape(n, ho, wo, cmid_p)

    # conv2 (3x3, stride 1, pad 1) -> bn2 -> relu  (implicit GEMM, flat output)
    h2_flat = conv3x3_bias_relu(h1, params["w2"], params["b2"])      # (n, ho*wo, cmid_p)

    # shortcut
    if "wsc" in params:
        sc = matmul_bias_act(xs_flat, params["wsc"], params["bsc"], relu=False)
    else:
        sc = xs_flat                                         # identity (cin_p == cout_p)

    # conv3 (1x1) -> bn3 -> +shortcut -> relu, fused in one kernel, f32 out
    out = matmul_bias_act(h2_flat.reshape(n * ho * wo, cmid_p),
                          params["w3"], params["b3"],
                          relu=True, residual=sc, out_dtype=jnp.float32)
    out = out.reshape(n, ho, wo, cout_p)
    if cout_p != cout:
        out = out[..., :cout]
    return jnp.transpose(out, (0, 3, 1, 2))                 # NHWC -> NCHW


if __name__ == "__main__":
    key = jax.random.PRNGKey(0)
    k_x, k_p1, k_p2 = jax.random.split(key, 3)

    # Case 1: projection shortcut (stride=2, in_planes != out_planes*4).
    N, IN_PLANES, OUT_PLANES, H, W, STRIDE = 2, 16, 8, 16, 16, 2
    x = jax.random.normal(k_x, (N, IN_PLANES, H, W), jnp.float32)
    params = make_bottleneck_params(k_p1, IN_PLANES, OUT_PLANES, STRIDE)
    y = bottleneck_forward(x, params, OUT_PLANES, STRIDE)
    jax.block_until_ready(y)
    assert y.shape == (N, OUT_PLANES * _MUL, H // STRIDE, W // STRIDE)
    assert bool(jnp.all(jnp.isfinite(y))) and bool(jnp.all(y >= 0))

    # Case 2: identity shortcut (stride=1, in_planes == out_planes*4).
    OUT_PLANES2 = 8
    IN_PLANES2 = OUT_PLANES2 * _MUL
    x2 = jax.random.normal(k_x, (N, IN_PLANES2, H, W), jnp.float32)
    params2 = make_bottleneck_params(k_p2, IN_PLANES2, OUT_PLANES2, 1)
    y2 = bottleneck_forward(x2, params2, OUT_PLANES2, 1)
    jax.block_until_ready(y2)
    assert y2.shape == (N, OUT_PLANES2 * _MUL, H, W)
    assert bool(jnp.all(jnp.isfinite(y2))) and bool(jnp.all(y2 >= 0))

    print("KERNEL_OK")
</pallas_src>

<mosaic_0001>
module attributes {stable_mosaic.version = 11 : i64} {
  func.func @kernel(%arg0: i32, %arg1: i32, %arg2: memref<128x128xbf16, #tpu.memory_space<vmem>>, %arg3: memref<128x128xbf16, #tpu.memory_space<vmem>>, %arg4: memref<1x128xf32, #tpu.memory_space<vmem>>, %arg5: memref<128x128xbf16, #tpu.memory_space<vmem>>) attributes {dimension_semantics = [#tpu.dimension_semantics<parallel>, #tpu.dimension_semantics<parallel>], iteration_bounds = array<i64: 1, 1>, scalar_prefetch = 0 : i64, scratch_operands = 0 : i64, tpu.core_type = #tpu.core_type<tc>, window_params = [{transform_indices = @transform_0, window_bounds = array<i64: 128, 128>}, {transform_indices = @transform_1, window_bounds = array<i64: 128, 128>}, {transform_indices = @transform_2, window_bounds = array<i64: 1, 128>}, {transform_indices = @transform_3, window_bounds = array<i64: 128, 128>}]} {
    %c0 = arith.constant 0 : index
    %c0_0 = arith.constant 0 : index
    %0 = vector.load %arg2[%c0, %c0_0] : memref<128x128xbf16, #tpu.memory_space<vmem>>, vector<128x128xbf16>
    %c0_1 = arith.constant 0 : index
    %c0_2 = arith.constant 0 : index
    %1 = vector.load %arg3[%c0_1, %c0_2] : memref<128x128xbf16, #tpu.memory_space<vmem>>, vector<128x128xbf16>
    %cst = arith.constant dense<0.000000e+00> : vector<128x128xf32>
    %2 = tpu.matmul %0, %1, %cst {dimension_numbers = #tpu.dot_dimension_numbers<[1], [0], [0], [1], [0, 0, 1, 1], [], []>} : vector<128x128xbf16>, vector<128x128xbf16>, vector<128x128xf32> -> vector<128x128xf32>
    %c0_3 = arith.constant 0 : index
    %c0_4 = arith.constant 0 : index
    %3 = vector.load %arg4[%c0_3, %c0_4] : memref<1x128xf32, #tpu.memory_space<vmem>>, vector<1x128xf32>
    %4 = vector.broadcast %3 : vector<1x128xf32> to vector<128x128xf32>
    %5 = arith.addf %2, %4 : vector<128x128xf32>
    %cst_5 = arith.constant 0.000000e+00 : f32
    %6 = vector.broadcast %cst_5 : f32 to vector<128x128xf32>
    %7 = arith.maximumf %5, %6 : vector<128x128xf32>
    %8 = arith.truncf %7 : vector<128x128xf32> to vector<128x128xbf16>
    %c0_6 = arith.constant 0 : index
    %c0_7 = arith.constant 0 : index
    %9 = vector.load %arg5[%c0_6, %c0_7] : memref<128x128xbf16, #tpu.memory_space<vmem>>, vector<128x128xbf16>
    tpu.vector_store %arg5[%c0_6, %c0_7], %8 {strides = array<i32>} : memref<128x128xbf16, #tpu.memory_space<vmem>>, vector<128x128xbf16>,
    return
  }
  func.func @transform_0(%arg0: i32, %arg1: i32) -> (i32, i32) {
    %c0_i32 = arith.constant 0 : i32
    %c0_i32_0 = arith.constant 0 : i32
    return %arg0, %c0_i32 : i32, i32
  }
  func.func @transform_1(%arg0: i32, %arg1: i32) -> (i32, i32) {
    %c0_i32 = arith.constant 0 : i32
    %c0_i32_0 = arith.constant 0 : i32
    return %c0_i32, %arg1 : i32, i32
  }
  func.func @transform_2(%arg0: i32, %arg1: i32) -> (i32, i32) {
    %c0_i32 = arith.constant 0 : i32
    %c0_i32_0 = arith.constant 0 : i32
    return %c0_i32, %arg1 : i32, i32
  }
  func.func @transform_3(%arg0: i32, %arg1: i32) -> (i32, i32) {
    %c0_i32 = arith.constant 0 : i32
    return %arg0, %arg1 : i32, i32
  }
}

module attributes {stable_mosaic.version = 11 : i64} {
  func.func @kernel(%arg0: i32, %arg1: i32, %arg2: memref<128x128xbf16, #tpu.memory_space<vmem>>, %arg3: memref<128x128xbf16, #tpu.memory_space<vmem>>, %arg4: memref<1x128xf32, #tpu.memory_space<vmem>>, %arg5: memref<128x128xbf16, #tpu.memory_space<vmem>>) attributes {dimension_semantics = [#tpu.dimension_semantics<parallel>, #tpu.dimension_semantics<parallel>], iteration_bounds = array<i64: 1, 1>, scalar_prefetch = 0 : i64, scratch_operands = 0 : i64, tpu.core_type = #tpu.core_type<tc>, window_params = [{transform_indices = @transform_0, window_bounds = array<i64: 128, 128>}, {transform_indices = @transform_1, window_bounds = array<i64: 128, 128>}, {transform_indices = @transform_2, window_bounds = array<i64: 1, 128>}, {transform_indices = @transform_3, window_bounds = array<i64: 128, 128>}]} {
    %c0 = arith.constant 0 : index
    %c0_0 = arith.constant 0 : index
    %0 = vector.load %arg2[%c0, %c0_0] : memref<128x128xbf16, #tpu.memory_space<vmem>>, vector<128x128xbf16>
    %c0_1 = arith.constant 0 : index
    %c0_2 = arith.constant 0 : index
    %1 = vector.load %arg3[%c0_1, %c0_2] : memref<128x128xbf16, #tpu.memory_space<vmem>>, vector<128x128xbf16>
    %cst = arith.constant dense<0.000000e+00> : vector<128x128xf32>
    %2 = tpu.matmul %0, %1, %cst {dimension_numbers = #tpu.dot_dimension_numbers<[1], [0], [0], [1], [0, 0, 1, 1], [], []>} : vector<128x128xbf16>, vector<128x128xbf16>, vector<128x128xf32> -> vector<128x128xf32>
    %c0_3 = arith.constant 0 : index
    %c0_4 = arith.constant 0 : index
    %3 = vector.load %arg4[%c0_3, %c0_4] : memref<1x128xf32, #tpu.memory_space<vmem>>, vector<1x128xf32>
    %4 = vector.broadcast %3 : vector<1x128xf32> to vector<128x128xf32>
    %5 = arith.addf %2, %4 : vector<128x128xf32>
    %6 = arith.truncf %5 : vector<128x128xf32> to vector<128x128xbf16>
    %c0_5 = arith.constant 0 : index
    %c0_6 = arith.constant 0 : index
    %7 = vector.load %arg5[%c0_5, %c0_6] : memref<128x128xbf16, #tpu.memory_space<vmem>>, vector<128x128xbf16>
    tpu.vector_store %arg5[%c0_5, %c0_6], %6 {strides = array<i32>} : memref<128x128xbf16, #tpu.memory_space<vmem>>, vector<128x128xbf16>,
    return
  }
  func.func @transform_0(%arg0: i32, %arg1: i32) -> (i32, i32) {
    %c0_i32 = arith.constant 0 : i32
    %c0_i32_0 = arith.constant 0 : i32
    return %arg0, %c0_i32 : i32, i32
  }
  func.func @transform_1(%arg0: i32, %arg1: i32) -> (i32, i32) {
    %c0_i32 = arith.constant 0 : i32
    %c0_i32_0 = arith.constant 0 : i32
    return %c0_i32, %arg1 : i32, i32
  }
  func.func @transform_2(%arg0: i32, %arg1: i32) -> (i32, i32) {
    %c0_i32 = arith.constant 0 : i32
    %c0_i32_0 = arith.constant 0 : i32
    return %c0_i32, %arg1 : i32, i32
  }
  func.func @transform_3(%arg0: i32, %arg1: i32) -> (i32, i32) {
    %c0_i32 = arith.constant 0 : i32
    return %arg0, %arg1 : i32, i32
  }
}

module attributes {stable_mosaic.version = 11 : i64} {
  func.func @_conv3x3_kernel(%arg0: i32, %arg1: i32, %arg2: memref<2x10x10x128xbf16, #tpu.memory_space<vmem>>, %arg3: memref<3x384x128xbf16, #tpu.memory_space<vmem>>, %arg4: memref<1x128xf32, #tpu.memory_space<vmem>>, %arg5: memref<2x64x128xbf16, #tpu.memory_space<vmem>>) attributes {dimension_semantics = [#tpu.dimension_semantics<parallel>, #tpu.dimension_semantics<parallel>], iteration_bounds = array<i64: 1, 1>, scalar_prefetch = 0 : i64, scratch_operands = 0 : i64, tpu.core_type = #tpu.core_type<tc>, window_params = [{transform_indices = @transform_0, window_bounds = array<i64: 2, 10, 10, 128>}, {pipeline_mode = #tpu.pipeline_mode<synchronous>, transform_indices = @transform_1, window_bounds = array<i64: 3, 384, 128>}, {pipeline_mode = #tpu.pipeline_mode<synchronous>, transform_indices = @transform_2, window_bounds = array<i64: 1, 128>}, {transform_indices = @transform_3, window_bounds = array<i64: 2, 64, 128>}]} {
    %c8_i32 = arith.constant 8 : i32
    %0 = arith.muli %arg1, %c8_i32 : i32
    %c0 = arith.constant 0 : index
    %1 = arith.index_cast %0 : i32 to index
    %c0_0 = arith.constant 0 : index
    %c0_1 = arith.constant 0 : index
    %2 = vector.load %arg2[%c0, %1, %c0_0, %c0_1] : memref<2x10x10x128xbf16, #tpu.memory_space<vmem>>, vector<2x10x10x128xbf16>
    %3 = vector.extract_strided_slice %2 {offsets = [0, 0, 0, 0], sizes = [2, 10, 8, 128], strides = [1, 1, 1, 1]} : vector<2x10x10x128xbf16> to vector<2x10x8x128xbf16>
    %4 = vector.extract_strided_slice %2 {offsets = [0, 0, 1, 0], sizes = [2, 10, 8, 128], strides = [1, 1, 1, 1]} : vector<2x10x10x128xbf16> to vector<2x10x8x128xbf16>
    %5 = vector.extract_strided_slice %2 {offsets = [0, 0, 2, 0], sizes = [2, 10, 8, 128], strides = [1, 1, 1, 1]} : vector<2x10x10x128xbf16> to vector<2x10x8x128xbf16>
    %6 = tpu.concatenate %3, %4, %5 in 3 : vector<2x10x8x128xbf16>, vector<2x10x8x128xbf16>, vector<2x10x8x128xbf16> -> vector<2x10x8x384xbf16>
    %c0_2 = arith.constant 0 : index
    %c0_3 = arith.constant 0 : index
    %7 = vector.load %arg4[%c0_2, %c0_3] : memref<1x128xf32, #tpu.memory_space<vmem>>, vector<1x128xf32>
    %8 = vector.shape_cast %7 : vector<1x128xf32> to vector<1x128xf32>
    %9 = vector.broadcast %8 : vector<1x128xf32> to vector<128x128xf32>
    %10 = vector.extract_strided_slice %6 {offsets = [0, 0, 0, 0], sizes = [2, 8, 8, 384], strides = [1, 1, 1, 1]} : vector<2x10x8x384xbf16> to vector<2x8x8x384xbf16>
    %11 = vector.shape_cast %10 : vector<2x8x8x384xbf16> to vector<128x384xbf16>
    %c0_4 = arith.constant 0 : index
    %c0_5 = arith.constant 0 : index
    %c0_6 = arith.constant 0 : index
    %12 = vector.load %arg3[%c0_4, %c0_5, %c0_6] : memref<3x384x128xbf16, #tpu.memory_space<vmem>>, vector<1x384x128xbf16>
    %13 = vector.shape_cast %12 : vector<1x384x128xbf16> to vector<384x128xbf16>
    %cst = arith.constant dense<0.000000e+00> : vector<128x128xf32>
    %14 = tpu.matmul %11, %13, %cst {dimension_numbers = #tpu.dot_dimension_numbers<[1], [0], [0], [1], [0, 0, 1, 1], [], []>} : vector<128x384xbf16>, vector<384x128xbf16>, vector<128x128xf32> -> vector<128x128xf32>
    %15 = arith.addf %9, %14 : vector<128x128xf32>
    %16 = vector.extract_strided_slice %6 {offsets = [0, 1, 0, 0], sizes = [2, 8, 8, 384], strides = [1, 1, 1, 1]} : vector<2x10x8x384xbf16> to vector<2x8x8x384xbf16>
    %17 = vector.shape_cast %16 : vector<2x8x8x384xbf16> to vector<128x384xbf16>
    %c1 = arith.constant 1 : index
    %c0_7 = arith.constant 0 : index
    %c0_8 = arith.constant 0 : index
    %18 = vector.load %arg3[%c1, %c0_7, %c0_8] : memref<3x384x128xbf16, #tpu.memory_space<vmem>>, vector<1x384x128xbf16>
    %19 = vector.shape_cast %18 : vector<1x384x128xbf16> to vector<384x128xbf16>
    %cst_9 = arith.constant dense<0.000000e+00> : vector<128x128xf32>
    %20 = tpu.matmul %17, %19, %cst_9 {dimension_numbers = #tpu.dot_dimension_numbers<[1], [0], [0], [1], [0, 0, 1, 1], [], []>} : vector<128x384xbf16>, vector<384x128xbf16>, vector<128x128xf32> -> vector<128x128xf32>
    %21 = arith.addf %15, %20 : vector<128x128xf32>
    %22 = vector.extract_strided_slice %6 {offsets = [0, 2, 0, 0], sizes = [2, 8, 8, 384], strides = [1, 1, 1, 1]} : vector<2x10x8x384xbf16> to vector<2x8x8x384xbf16>
    %23 = vector.shape_cast %22 : vector<2x8x8x384xbf16> to vector<128x384xbf16>
    %c2 = arith.constant 2 : index
    %c0_10 = arith.constant 0 : index
    %c0_11 = arith.constant 0 : index
    %24 = vector.load %arg3[%c2, %c0_10, %c0_11] : memref<3x384x128xbf16, #tpu.memory_space<vmem>>, vector<1x384x128xbf16>
    %25 = vector.shape_cast %24 : vector<1x384x128xbf16> to vector<384x128xbf16>
    %cst_12 = arith.constant dense<0.000000e+00> : vector<128x128xf32>
    %26 = tpu.matmul %23, %25, %cst_12 {dimension_numbers = #tpu.dot_dimension_numbers<[1], [0], [0], [1], [0, 0, 1, 1], [], []>} : vector<128x384xbf16>, vector<384x128xbf16>, vector<128x128xf32> -> vector<128x128xf32>
    %27 = arith.addf %21, %26 : vector<128x128xf32>
    %cst_13 = arith.constant 0.000000e+00 : f32
    %28 = vector.broadcast %cst_13 : f32 to vector<128x128xf32>
    %29 = arith.maximumf %27, %28 : vector<128x128xf32>
    %30 = vector.shape_cast %29 : vector<128x128xf32> to vector<2x64x128xf32>
    %31 = arith.truncf %30 : vector<2x64x128xf32> to vector<2x64x128xbf16>
    %c0_14 = arith.constant 0 : index
    %c0_15 = arith.constant 0 : index
    %c0_16 = arith.constant 0 : index
    %32 = vector.load %arg5[%c0_14, %c0_15, %c0_16] : memref<2x64x128xbf16, #tpu.memory_space<vmem>>, vector<2x64x128xbf16>
    tpu.vector_store %arg5[%c0_14, %c0_15, %c0_16], %31 {strides = array<i32>} : memref<2x64x128xbf16, #tpu.memory_space<vmem>>, vector<2x64x128xbf16>,
    return
  }
  func.func @transform_0(%arg0: i32, %arg1: i32) -> (i32, i32, i32, i32) {
    %c0_i32 = arith.constant 0 : i32
    %c0_i32_0 = arith.constant 0 : i32
    %c0_i32_1 = arith.constant 0 : i32
    %c0_i32_2 = arith.constant 0 : i32
    return %arg0, %c0_i32, %c0_i32_0, %c0_i32_1 : i32, i32, i32, i32
  }
  func.func @transform_1(%arg0: i32, %arg1: i32) -> (i32, i32, i32) {
    %c0_i32 = arith.constant 0 : i32
    %c0_i32_0 = arith.constant 0 : i32
    %c0_i32_1 = arith.constant 0 : i32
    %c0_i32_2 = arith.constant 0 : i32
    return %c0_i32, %c0_i32_0, %c0_i32_1 : i32, i32, i32
  }
  func.func @transform_2(%arg0: i32, %arg1: i32) -> (i32, i32) {
    %c0_i32 = arith.constant 0 : i32
    %c0_i32_0 = arith.constant 0 : i32
    %c0_i32_1 = arith.constant 0 : i32
    return %c0_i32, %c0_i32_0 : i32, i32
  }
  func.func @transform_3(%arg0: i32, %arg1: i32) -> (i32, i32, i32) {
    %c0_i32 = arith.constant 0 : i32
    %c0_i32_0 = arith.constant 0 : i32
    return %arg0, %arg1, %c0_i32 : i32, i32, i32
  }
}

module attributes {stable_mosaic.version = 11 : i64} {
  func.func @kernel(%arg0: i32, %arg1: i32, %arg2: memref<128x128xbf16, #tpu.memory_space<vmem>>, %arg3: memref<128x128xbf16, #tpu.memory_space<vmem>>, %arg4: memref<1x128xf32, #tpu.memory_space<vmem>>, %arg5: memref<128x128xbf16, #tpu.memory_space<vmem>>, %arg6: memref<128x128xf32, #tpu.memory_space<vmem>>) attributes {dimension_semantics = [#tpu.dimension_semantics<parallel>, #tpu.dimension_semantics<parallel>], iteration_bounds = array<i64: 1, 1>, scalar_prefetch = 0 : i64, scratch_operands = 0 : i64, tpu.core_type = #tpu.core_type<tc>, window_params = [{transform_indices = @transform_0, window_bounds = array<i64: 128, 128>}, {transform_indices = @transform_1, window_bounds = array<i64: 128, 128>}, {transform_indices = @transform_2, window_bounds = array<i64: 1, 128>}, {transform_indices = @transform_3, window_bounds = array<i64: 128, 128>}, {transform_indices = @transform_4, window_bounds = array<i64: 128, 128>}]} {
    %c0 = arith.constant 0 : index
    %c0_0 = arith.constant 0 : index
    %0 = vector.load %arg2[%c0, %c0_0] : memref<128x128xbf16, #tpu.memory_space<vmem>>, vector<128x128xbf16>
    %c0_1 = arith.constant 0 : index
    %c0_2 = arith.constant 0 : index
    %1 = vector.load %arg3[%c0_1, %c0_2] : memref<128x128xbf16, #tpu.memory_space<vmem>>, vector<128x128xbf16>
    %cst = arith.constant dense<0.000000e+00> : vector<128x128xf32>
    %2 = tpu.matmul %0, %1, %cst {dimension_numbers = #tpu.dot_dimension_numbers<[1], [0], [0], [1], [0, 0, 1, 1], [], []>} : vector<128x128xbf16>, vector<128x128xbf16>, vector<128x128xf32> -> vector<128x128xf32>
    %c0_3 = arith.constant 0 : index
    %c0_4 = arith.constant 0 : index
    %3 = vector.load %arg4[%c0_3, %c0_4] : memref<1x128xf32, #tpu.memory_space<vmem>>, vector<1x128xf32>
    %4 = vector.broadcast %3 : vector<1x128xf32> to vector<128x128xf32>
    %5 = arith.addf %2, %4 : vector<128x128xf32>
    %c0_5 = arith.constant 0 : index
    %c0_6 = arith.constant 0 : index
    %6 = vector.load %arg5[%c0_5, %c0_6] : memref<128x128xbf16, #tpu.memory_space<vmem>>, vector<128x128xbf16>
    %7 = arith.extf %6 : vector<128x128xbf16> to vector<128x128xf32>
    %8 = arith.addf %5, %7 : vector<128x128xf32>
    %cst_7 = arith.constant 0.000000e+00 : f32
    %9 = vector.broadcast %cst_7 : f32 to vector<128x128xf32>
    %10 = arith.maximumf %8, %9 : vector<128x128xf32>
    %c0_8 = arith.constant 0 : index
    %c0_9 = arith.constant 0 : index
    %11 = vector.load %arg6[%c0_8, %c0_9] : memref<128x128xf32, #tpu.memory_space<vmem>>, vector<128x128xf32>
    tpu.vector_store %arg6[%c0_8, %c0_9], %10 {strides = array<i32>} : memref<128x128xf32, #tpu.memory_space<vmem>>, vector<128x128xf32>,
    return
  }
  func.func @transform_0(%arg0: i32, %arg1: i32) -> (i32, i32) {
    %c0_i32 = arith.constant 0 : i32
    %c0_i32_0 = arith.constant 0 : i32
    return %arg0, %c0_i32 : i32, i32
  }
  func.func @transform_1(%arg0: i32, %arg1: i32) -> (i32, i32) {
    %c0_i32 = arith.constant 0 : i32
    %c0_i32_0 = arith.constant 0 : i32
    return %c0_i32, %arg1 : i32, i32
  }
  func.func @transform_2(%arg0: i32, %arg1: i32) -> (i32, i32) {
    %c0_i32 = arith.constant 0 : i32
    %c0_i32_0 = arith.constant 0 : i32
    return %c0_i32, %arg1 : i32, i32
  }
  func.func @transform_3(%arg0: i32, %arg1: i32) -> (i32, i32) {
    %c0_i32 = arith.constant 0 : i32
    return %arg0, %arg1 : i32, i32
  }
  func.func @transform_4(%arg0: i32, %arg1: i32) -> (i32, i32) {
    %c0_i32 = arith.constant 0 : i32
    return %arg0, %arg1 : i32, i32
  }
}

</mosaic_0001>

<bundles_post_ra>
// kernel: bottleneck_forward.6
= control target key start
LH: loop header
LB: loop body
LE: loop exit
PB: predicated region body
PF: predicated region fallthrough
CT: control target
= control target key end

     0   :  { %s478_s1 = inlined_call_operand.vmem [shape: bf16[128,128], index: 1, kind: input, shape index: {}]   ;;  %s479_s2 = inlined_call_operand.vmem [shape: f32[1,128], index: 2, kind: input, shape index: {}]   ;;  %s480_s0 = inlined_call_operand.vmem [shape: bf16[128,128], index: 0, kind: input, shape index: {}]   ;;  %s481_s3 = inlined_call_operand.vmem [shape: bf16[128,128], index: 3, kind: output, shape index: {}]  }
   0x1   :  { %v310_v0 = vld [vmem:[%s478_s1 + $0x38] sm:$0xff]  ;;  %v309_v1 = vld [vmem:[%s478_s1 + $0x30] sm:$0xff]  ;;  %v308_v2 = vld [vmem:[%s478_s1 + $0x28] sm:$0xff] }
   0x2   :  { %146 = vmatpush.bf16.msra.mxu0 %v310_v0  ;;  %358 = vmatpush.bf16.msra.mxu1 %v310_v0  ;;  %v307_v3 = vld [vmem:[%s478_s1 + $0x20] sm:$0xff]  ;;  %v306_v4 = vld [vmem:[%s478_s1 + $0x18] sm:$0xff]  ;;  %v305_v5 = vld [vmem:[%s478_s1 + $0x10] sm:$0xff] }
   0x3   :  { %359 = vmatpush.bf16.msra.mxu2 %v310_v0  ;;  %360 = vmatpush.bf16.msra.mxu3 %v310_v0  ;;  %v304_v6 = vld [vmem:[%s478_s1 + $0x8] sm:$0xff]  ;;  %v303_v7 = vld [vmem:[%s478_s1] sm:$0xff]  ;;  %v297_v9 = vld [vmem:[%s480_s0 + $0x10] sm:$0xff] }
   0x4   :  { %v295_v8 = vld [vmem:[%s480_s0] sm:$0xff]  ;;  %v301_v11 = vld [vmem:[%s480_s0 + $0x30] sm:$0xff]  ;;  %v296_v12 = vld [vmem:[%s480_s0 + $0x8] sm:$0xff] }
   0x5   :  { %v299_v10 = vld [vmem:[%s480_s0 + $0x20] sm:$0xff]  ;;  %v298_v13 = vld [vmem:[%s480_s0 + $0x18] sm:$0xff]  ;;  %v300_v14 = vld [vmem:[%s480_s0 + $0x28] sm:$0xff] }
   0x6   :  { %147 = vmatpush.bf16.msra.mxu0 %v309_v1  ;;  %361 = vmatpush.bf16.msra.mxu1 %v309_v1  ;;  %v302_v15 = vld [vmem:[%s480_s0 + $0x38] sm:$0xff]  ;;  %v382_v18 = vld [vmem:[%s479_s2] ss:$0 sm:$0xff] }
   0x7   :  { %362 = vmatpush.bf16.msra.mxu2 %v309_v1  ;;  %363 = vmatpush.bf16.msra.mxu3 %v309_v1 }
   0xa   :  { %148 = vmatpush.bf16.msra.mxu0 %v308_v2  ;;  %364 = vmatpush.bf16.msra.mxu1 %v308_v2 }
   0xb   :  { %365 = vmatpush.bf16.msra.mxu2 %v308_v2  ;;  %366 = vmatpush.bf16.msra.mxu3 %v308_v2 }
   0xe   :  { %149 = vmatpush.bf16.msra.mxu0 %v307_v3  ;;  %367 = vmatpush.bf16.msra.mxu1 %v307_v3 }
   0xf   :  { %368 = vmatpush.bf16.msra.mxu2 %v307_v3  ;;  %369 = vmatpush.bf16.msra.mxu3 %v307_v3 }
  0x12   :  { %150 = vmatpush.bf16.msra.mxu0 %v306_v4  ;;  %370 = vmatpush.bf16.msra.mxu1 %v306_v4 }
  0x13   :  { %371 = vmatpush.bf16.msra.mxu2 %v306_v4  ;;  %372 = vmatpush.bf16.msra.mxu3 %v306_v4 }
  0x16   :  { %151 = vmatpush.bf16.msra.mxu0 %v305_v5  ;;  %373 = vmatpush.bf16.msra.mxu1 %v305_v5 }
  0x17   :  { %374 = vmatpush.bf16.msra.mxu2 %v305_v5  ;;  %375 = vmatpush.bf16.msra.mxu3 %v305_v5 }
  0x1a   :  { %152 = vmatpush.bf16.msra.mxu0 %v304_v6  ;;  %376 = vmatpush.bf16.msra.mxu1 %v304_v6 }
  0x1b   :  { %377 = vmatpush.bf16.msra.mxu2 %v304_v6  ;;  %378 = vmatpush.bf16.msra.mxu3 %v304_v6 }
  0x1e   :  { %153 = vmatpush.bf16.msra.mxu0 %v303_v7  ;;  %379 = vmatpush.bf16.msra.mxu1 %v303_v7 }
  0x1f   :  { %380 = vmatpush.bf16.msra.mxu2 %v303_v7  ;;  %381 = vmatpush.bf16.msra.mxu3 %v303_v7 }
  0x21   :  { %154 = vmatmul.bf16.vlgmr.msra.gmra.mxu0 %v295_v8  ;;  %164 = vmatmul.bf16.vlgmr.msra.gmra.mxu1 %v297_v9 }
  0x22   :  { %174 = vmatmul.bf16.vlgmr.msra.gmra.mxu2 %v299_v10  ;;  %184 = vmatmul.bf16.vlgmr.msra.gmra.mxu3 %v301_v11 }
  0x31   :  { %159 = vmatmul.bf16.gmra.mxu0 %v296_v12  ;;  %169 = vmatmul.bf16.gmra.mxu1 %v298_v13 }
  0x32   :  { %179 = vmatmul.bf16.gmra.mxu2 %v300_v14  ;;  %189 = vmatmul.bf16.gmra.mxu3 %v302_v15 }
  0x9e   :  { %v155_v16 = vpop.f32.mrf.mxu0  ;;  %v165_v17 = vpop.f32.mrf.mxu1 }
  0x9f   :  { %v156_v23 = vadd.f32 %v382_v18, %v155_v16  ;;  %v166_v24 = vadd.f32 %v382_v18, %v165_v17 }
  0xa5   :  { %v175_v19 = vpop.f32.mrf.mxu2  ;;  %v185_v20 = vpop.f32.mrf.mxu3 }
  0xa6   :  { %v157_v21 = vpop.f32.mrf.mxu0  ;;  %v167_v22 = vpop.f32.mrf.mxu1  ;;  %v176_v31 = vadd.f32 %v382_v18, %v175_v19  ;;  %v186_v32 = vadd.f32 %v382_v18, %v185_v20 }
  0xa7   :  { %v158_v25 = vadd.f32 %v382_v18, %v157_v21  ;;  %v168_v26 = vadd.f32 %v382_v18, %v167_v22 }
  0xa9   :  { %v314_v27 = vpack.c.bf16 %v158_v25, %v156_v23  ;;  %v324_v28 = vpack.c.bf16 %v168_v26, %v166_v24 }
  0xab   :  { %315 = vst [vmem:[%s481_s3] sm:$0xff] %v314_v27  }
  0xac   :  { %352 = vst [vmem:[%s481_s3 + $0x10] sm:$0xff] %v324_v28  }
  0xad   :  { %v177_v29 = vpop.f32.mrf.mxu2  ;;  %v187_v30 = vpop.f32.mrf.mxu3 }
  0xae   :  { %v178_v33 = vadd.f32 %v382_v18, %v177_v29  ;;  %v188_v34 = vadd.f32 %v382_v18, %v187_v30  ;;  %v160_v35 = vpop.f32.mrf.mxu0  ;;  %v170_v36 = vpop.f32.mrf.mxu1 }
  0xaf   :  { %v161_v43 = vadd.f32 %v382_v18, %v160_v35  ;;  %v171_v44 = vadd.f32 %v382_v18, %v170_v36 }
  0xb0   :  { %v334_v37 = vpack.c.bf16 %v178_v33, %v176_v31  ;;  %v344_v38 = vpack.c.bf16 %v188_v34, %v186_v32 }
  0xb2   :  { %354 = vst [vmem:[%s481_s3 + $0x20] sm:$0xff] %v334_v37  }
  0xb3   :  { %356 = vst [vmem:[%s481_s3 + $0x30] sm:$0xff] %v344_v38  }
  0xb5   :  { %v180_v39 = vpop.f32.mrf.mxu2  ;;  %v190_v40 = vpop.f32.mrf.mxu3 }
  0xb6   :  { %v162_v41 = vpop.f32.mrf.mxu0  ;;  %v172_v42 = vpop.f32.mrf.mxu1  ;;  %v181_v51 = vadd.f32 %v382_v18, %v180_v39  ;;  %v191_v52 = vadd.f32 %v382_v18, %v190_v40 }
  0xb7   :  { %v163_v45 = vadd.f32 %v382_v18, %v162_v41  ;;  %v173_v46 = vadd.f32 %v382_v18, %v172_v42 }
  0xb9   :  { %v319_v47 = vpack.c.bf16 %v163_v45, %v161_v43  ;;  %v329_v48 = vpack.c.bf16 %v173_v46, %v171_v44 }
  0xbb   :  { %351 = vst [vmem:[%s481_s3 + $0x8] sm:$0xff] %v319_v47  }
  0xbc   :  { %353 = vst [vmem:[%s481_s3 + $0x18] sm:$0xff] %v329_v48  }
  0xbd   :  { %v182_v49 = vpop.f32.mrf.mxu2  ;;  %v192_v50 = vpop.f32.mrf.mxu3 }
  0xbe   :  { %v183_v53 = vadd.f32 %v382_v18, %v182_v49  ;;  %v193_v54 = vadd.f32 %v382_v18, %v192_v50 }
  0xc0   :  { %v339_v55 = vpack.c.bf16 %v183_v53, %v181_v51  ;;  %v349_v56 = vpack.c.bf16 %v193_v54, %v191_v52 }
  0xc2   :  { %355 = vst [vmem:[%s481_s3 + $0x28] sm:$0xff] %v339_v55  }
  0xc3   :  { %357 = vst [vmem:[%s481_s3 + $0x38] sm:$0xff] %v349_v56  }

// kernel: bottleneck_forward.4
= control target key start
LH: loop header
LB: loop body
LE: loop exit
PB: predicated region body
PF: predicated region fallthrough
CT: control target
= control target key end

     0   :  { %s494_s1 = inlined_call_operand.vmem [shape: bf16[128,128], index: 1, kind: input, shape index: {}]   ;;  %s495_s2 = inlined_call_operand.vmem [shape: f32[1,128], index: 2, kind: input, shape index: {}]   ;;  %s496_s0 = inlined_call_operand.vmem [shape: bf16[128,128], index: 0, kind: input, shape index: {}]   ;;  %s497_s3 = inlined_call_operand.vmem [shape: bf16[128,128], index: 3, kind: output, shape index: {}]  }
   0x1   :  { %v326_v0 = vld [vmem:[%s494_s1 + $0x38] sm:$0xff]  ;;  %v325_v1 = vld [vmem:[%s494_s1 + $0x30] sm:$0xff]  ;;  %v324_v2 = vld [vmem:[%s494_s1 + $0x28] sm:$0xff] }
   0x2   :  { %146 = vmatpush.bf16.msra.mxu0 %v326_v0  ;;  %374 = vmatpush.bf16.msra.mxu1 %v326_v0  ;;  %v323_v3 = vld [vmem:[%s494_s1 + $0x20] sm:$0xff]  ;;  %v322_v4 = vld [vmem:[%s494_s1 + $0x18] sm:$0xff]  ;;  %v321_v5 = vld [vmem:[%s494_s1 + $0x10] sm:$0xff] }
   0x3   :  { %375 = vmatpush.bf16.msra.mxu2 %v326_v0  ;;  %376 = vmatpush.bf16.msra.mxu3 %v326_v0  ;;  %v320_v6 = vld [vmem:[%s494_s1 + $0x8] sm:$0xff]  ;;  %v319_v7 = vld [vmem:[%s494_s1] sm:$0xff]  ;;  %v313_v9 = vld [vmem:[%s496_s0 + $0x10] sm:$0xff] }
   0x4   :  { %v311_v8 = vld [vmem:[%s496_s0] sm:$0xff]  ;;  %v317_v11 = vld [vmem:[%s496_s0 + $0x30] sm:$0xff]  ;;  %v312_v12 = vld [vmem:[%s496_s0 + $0x8] sm:$0xff] }
   0x5   :  { %v315_v10 = vld [vmem:[%s496_s0 + $0x20] sm:$0xff]  ;;  %v314_v13 = vld [vmem:[%s496_s0 + $0x18] sm:$0xff]  ;;  %v316_v14 = vld [vmem:[%s496_s0 + $0x28] sm:$0xff] }
   0x6   :  { %147 = vmatpush.bf16.msra.mxu0 %v325_v1  ;;  %377 = vmatpush.bf16.msra.mxu1 %v325_v1  ;;  %v318_v15 = vld [vmem:[%s496_s0 + $0x38] sm:$0xff]  ;;  %v398_v18 = vld [vmem:[%s495_s2] ss:$0 sm:$0xff] }
   0x7   :  { %378 = vmatpush.bf16.msra.mxu2 %v325_v1  ;;  %379 = vmatpush.bf16.msra.mxu3 %v325_v1 }
   0xa   :  { %148 = vmatpush.bf16.msra.mxu0 %v324_v2  ;;  %380 = vmatpush.bf16.msra.mxu1 %v324_v2 }
   0xb   :  { %381 = vmatpush.bf16.msra.mxu2 %v324_v2  ;;  %382 = vmatpush.bf16.msra.mxu3 %v324_v2 }
   0xe   :  { %149 = vmatpush.bf16.msra.mxu0 %v323_v3  ;;  %383 = vmatpush.bf16.msra.mxu1 %v323_v3 }
   0xf   :  { %384 = vmatpush.bf16.msra.mxu2 %v323_v3  ;;  %385 = vmatpush.bf16.msra.mxu3 %v323_v3 }
  0x12   :  { %150 = vmatpush.bf16.msra.mxu0 %v322_v4  ;;  %386 = vmatpush.bf16.msra.mxu1 %v322_v4 }
  0x13   :  { %387 = vmatpush.bf16.msra.mxu2 %v322_v4  ;;  %388 = vmatpush.bf16.msra.mxu3 %v322_v4 }
  0x16   :  { %151 = vmatpush.bf16.msra.mxu0 %v321_v5  ;;  %389 = vmatpush.bf16.msra.mxu1 %v321_v5 }
  0x17   :  { %390 = vmatpush.bf16.msra.mxu2 %v321_v5  ;;  %391 = vmatpush.bf16.msra.mxu3 %v321_v5 }
  0x1a   :  { %152 = vmatpush.bf16.msra.mxu0 %v320_v6  ;;  %392 = vmatpush.bf16.msra.mxu1 %v320_v6 }
  0x1b   :  { %393 = vmatpush.bf16.msra.mxu2 %v320_v6  ;;  %394 = vmatpush.bf16.msra.mxu3 %v320_v6 }
  0x1e   :  { %153 = vmatpush.bf16.msra.mxu0 %v319_v7  ;;  %395 = vmatpush.bf16.msra.mxu1 %v319_v7 }
  0x1f   :  { %396 = vmatpush.bf16.msra.mxu2 %v319_v7  ;;  %397 = vmatpush.bf16.msra.mxu3 %v319_v7 }
  0x21   :  { %154 = vmatmul.bf16.vlgmr.msra.gmra.mxu0 %v311_v8  ;;  %164 = vmatmul.bf16.vlgmr.msra.gmra.mxu1 %v313_v9 }
  0x22   :  { %174 = vmatmul.bf16.vlgmr.msra.gmra.mxu2 %v315_v10  ;;  %184 = vmatmul.bf16.vlgmr.msra.gmra.mxu3 %v317_v11 }
  0x31   :  { %159 = vmatmul.bf16.gmra.mxu0 %v312_v12  ;;  %169 = vmatmul.bf16.gmra.mxu1 %v314_v13 }
  0x32   :  { %179 = vmatmul.bf16.gmra.mxu2 %v316_v14  ;;  %189 = vmatmul.bf16.gmra.mxu3 %v318_v15 }
  0x9e   :  { %v155_v16 = vpop.f32.mrf.mxu0  ;;  %v165_v17 = vpop.f32.mrf.mxu1 }
  0x9f   :  { %v156_v19 = vadd.f32 %v398_v18, %v155_v16  ;;  %v166_v20 = vadd.f32 %v398_v18, %v165_v17 }
  0xa1   :  { %v195_v27 = vmax.f32 %v156_v19, 0.0  ;;  %v199_v28 = vmax.f32 %v166_v20, 0.0 }
  0xa5   :  { %v175_v21 = vpop.f32.mrf.mxu2  ;;  %v185_v22 = vpop.f32.mrf.mxu3 }
  0xa6   :  { %v157_v23 = vpop.f32.mrf.mxu0  ;;  %v167_v24 = vpop.f32.mrf.mxu1  ;;  %v176_v33 = vadd.f32 %v398_v18, %v175_v21  ;;  %v186_v34 = vadd.f32 %v398_v18, %v185_v22 }
  0xa7   :  { %v158_v25 = vadd.f32 %v398_v18, %v157_v23  ;;  %v168_v26 = vadd.f32 %v398_v18, %v167_v24 }
  0xa8   :  { %v203_v41 = vmax.f32 %v176_v33, 0.0  ;;  %v207_v42 = vmax.f32 %v186_v34, 0.0 }
  0xa9   :  { %v196_v29 = vmax.f32 %v158_v25, 0.0  ;;  %v200_v30 = vmax.f32 %v168_v26, 0.0 }
  0xab   :  { %v330_v31 = vpack.c.bf16 %v196_v29, %v195_v27  ;;  %v340_v32 = vpack.c.bf16 %v200_v30, %v199_v28 }
  0xad   :  { %331 = vst [vmem:[%s497_s3] sm:$0xff] %v330_v31   ;;  %v177_v35 = vpop.f32.mrf.mxu2  ;;  %v187_v36 = vpop.f32.mrf.mxu3 }
  0xae   :  { %368 = vst [vmem:[%s497_s3 + $0x10] sm:$0xff] %v340_v32   ;;  %v178_v37 = vadd.f32 %v398_v18, %v177_v35  ;;  %v188_v38 = vadd.f32 %v398_v18, %v187_v36  ;;  %v160_v39 = vpop.f32.mrf.mxu0  ;;  %v170_v40 = vpop.f32.mrf.mxu1 }
  0xaf   :  { %v161_v47 = vadd.f32 %v398_v18, %v160_v39  ;;  %v171_v48 = vadd.f32 %v398_v18, %v170_v40 }
  0xb0   :  { %v204_v43 = vmax.f32 %v178_v37, 0.0  ;;  %v208_v44 = vmax.f32 %v188_v38, 0.0 }
  0xb1   :  { %v197_v55 = vmax.f32 %v161_v47, 0.0  ;;  %v201_v56 = vmax.f32 %v171_v48, 0.0 }
  0xb2   :  { %v350_v45 = vpack.c.bf16 %v204_v43, %v203_v41  ;;  %v360_v46 = vpack.c.bf16 %v208_v44, %v207_v42 }
  0xb4   :  { %370 = vst [vmem:[%s497_s3 + $0x20] sm:$0xff] %v350_v45  }
  0xb5   :  { %372 = vst [vmem:[%s497_s3 + $0x30] sm:$0xff] %v360_v46   ;;  %v180_v49 = vpop.f32.mrf.mxu2  ;;  %v190_v50 = vpop.f32.mrf.mxu3 }
  0xb6   :  { %v162_v51 = vpop.f32.mrf.mxu0  ;;  %v172_v52 = vpop.f32.mrf.mxu1  ;;  %v181_v61 = vadd.f32 %v398_v18, %v180_v49  ;;  %v191_v62 = vadd.f32 %v398_v18, %v190_v50 }
  0xb7   :  { %v163_v53 = vadd.f32 %v398_v18, %v162_v51  ;;  %v173_v54 = vadd.f32 %v398_v18, %v172_v52 }
  0xb8   :  { %v205_v3 = vmax.f32 %v181_v61, 0.0  ;;  %v209_v4 = vmax.f32 %v191_v62, 0.0 }
  0xb9   :  { %v198_v57 = vmax.f32 %v163_v53, 0.0  ;;  %v202_v58 = vmax.f32 %v173_v54, 0.0 }
  0xbb   :  { %v335_v59 = vpack.c.bf16 %v198_v57, %v197_v55  ;;  %v345_v60 = vpack.c.bf16 %v202_v58, %v201_v56 }
  0xbd   :  { %367 = vst [vmem:[%s497_s3 + $0x8] sm:$0xff] %v335_v59   ;;  %v182_v63 = vpop.f32.mrf.mxu2  ;;  %v192_v0 = vpop.f32.mrf.mxu3 }
  0xbe   :  { %369 = vst [vmem:[%s497_s3 + $0x18] sm:$0xff] %v345_v60   ;;  %v183_v1 = vadd.f32 %v398_v18, %v182_v63  ;;  %v193_v2 = vadd.f32 %v398_v18, %v192_v0 }
  0xc0   :  { %v206_v5 = vmax.f32 %v183_v1, 0.0  ;;  %v210_v6 = vmax.f32 %v193_v2, 0.0 }
  0xc2   :  { %v355_v7 = vpack.c.bf16 %v206_v5, %v205_v3  ;;  %v365_v8 = vpack.c.bf16 %v210_v6, %v209_v4 }
  0xc4   :  { %371 = vst [vmem:[%s497_s3 + $0x28] sm:$0xff] %v355_v7  }
  0xc5   :  { %373 = vst [vmem:[%s497_s3 + $0x38] sm:$0xff] %v365_v8  }

// kernel: bottleneck_forward.7
= control target key start
LH: loop header
LB: loop body
LE: loop exit
PB: predicated region body
PF: predicated region fallthrough
CT: control target
= control target key end

     0   :  { %s592_s1 = inlined_call_operand.vmem [shape: bf16[128,128], index: 1, kind: input, shape index: {}]   ;;  %s593_s2 = inlined_call_operand.vmem [shape: f32[1,128], index: 2, kind: input, shape index: {}]   ;;  %s594_s0 = inlined_call_operand.vmem [shape: bf16[128,128], index: 0, kind: input, shape index: {}]   ;;  %s595_s3 = inlined_call_operand.vmem [shape: bf16[128,128], index: 3, kind: input, shape index: {}]   ;;  %s596_s4 = inlined_call_operand.vmem [shape: f32[128,128], index: 4, kind: output, shape index: {}]  }
   0x1   :  { %v361_v0 = vld [vmem:[%s592_s1 + $0x38] sm:$0xff]  ;;  %v360_v1 = vld [vmem:[%s592_s1 + $0x30] sm:$0xff]  ;;  %v359_v2 = vld [vmem:[%s592_s1 + $0x28] sm:$0xff] }
   0x2   :  { %149 = vmatpush.bf16.msra.mxu0 %v361_v0  ;;  %401 = vmatpush.bf16.msra.mxu1 %v361_v0  ;;  %v358_v3 = vld [vmem:[%s592_s1 + $0x20] sm:$0xff]  ;;  %v357_v4 = vld [vmem:[%s592_s1 + $0x18] sm:$0xff]  ;;  %v356_v5 = vld [vmem:[%s592_s1 + $0x10] sm:$0xff] }
   0x3   :  { %402 = vmatpush.bf16.msra.mxu2 %v361_v0  ;;  %403 = vmatpush.bf16.msra.mxu3 %v361_v0  ;;  %v355_v6 = vld [vmem:[%s592_s1 + $0x8] sm:$0xff]  ;;  %v354_v7 = vld [vmem:[%s592_s1] sm:$0xff]  ;;  %v348_v9 = vld [vmem:[%s594_s0 + $0x10] sm:$0xff] }
   0x4   :  { %v346_v8 = vld [vmem:[%s594_s0] sm:$0xff]  ;;  %v352_v11 = vld [vmem:[%s594_s0 + $0x30] sm:$0xff]  ;;  %v347_v12 = vld [vmem:[%s594_s0 + $0x8] sm:$0xff] }
   0x5   :  { %v350_v10 = vld [vmem:[%s594_s0 + $0x20] sm:$0xff]  ;;  %v349_v13 = vld [vmem:[%s594_s0 + $0x18] sm:$0xff]  ;;  %v351_v14 = vld [vmem:[%s594_s0 + $0x28] sm:$0xff] }
   0x6   :  { %150 = vmatpush.bf16.msra.mxu0 %v360_v1  ;;  %404 = vmatpush.bf16.msra.mxu1 %v360_v1  ;;  %v353_v15 = vld [vmem:[%s594_s0 + $0x38] sm:$0xff]  ;;  %v363_v16 = vld [vmem:[%s595_s3] sm:$0xff]   ;;  %v395_v17 = vld [vmem:[%s595_s3 + $0x10] sm:$0xff]  }
   0x7   :  { %405 = vmatpush.bf16.msra.mxu2 %v360_v1  ;;  %406 = vmatpush.bf16.msra.mxu3 %v360_v1  ;;  %v508_v18 = vld [vmem:[%s593_s2] ss:$0 sm:$0xff]  ;;  %v364_v19 = vunpack.c.l.bf16 %v363_v16  ;;  %v372_v20 = vunpack.c.l.bf16 %v395_v17  ;;  %v399_v28 = vld [vmem:[%s595_s3 + $0x30] sm:$0xff]   ;;  %v365_v35 = vunpack.c.h.bf16 %v363_v16  ;;  %v373_v36 = vunpack.c.h.bf16 %v395_v17  ;;  %v394_v49 = vld [vmem:[%s595_s3 + $0x8] sm:$0xff]  }
   0x8   :  { %v397_v27 = vld [vmem:[%s595_s3 + $0x20] sm:$0xff]   ;;  %v388_v32 = vunpack.c.l.bf16 %v399_v28  ;;  %v396_v50 = vld [vmem:[%s595_s3 + $0x18] sm:$0xff]   ;;  %v389_v54 = vunpack.c.h.bf16 %v399_v28  ;;  %v368_v57 = vunpack.c.l.bf16 %v394_v49 }
   0x9   :  { %v380_v31 = vunpack.c.l.bf16 %v397_v27  ;;  %v381_v53 = vunpack.c.h.bf16 %v397_v27  ;;  %v376_v58 = vunpack.c.l.bf16 %v396_v50  ;;  %v377_v16 = vunpack.c.h.bf16 %v396_v50 }
   0xa   :  { %151 = vmatpush.bf16.msra.mxu0 %v359_v2  ;;  %407 = vmatpush.bf16.msra.mxu1 %v359_v2 }
   0xb   :  { %408 = vmatpush.bf16.msra.mxu2 %v359_v2  ;;  %409 = vmatpush.bf16.msra.mxu3 %v359_v2 }
   0xe   :  { %152 = vmatpush.bf16.msra.mxu0 %v358_v3  ;;  %410 = vmatpush.bf16.msra.mxu1 %v358_v3 }
   0xf   :  { %411 = vmatpush.bf16.msra.mxu2 %v358_v3  ;;  %412 = vmatpush.bf16.msra.mxu3 %v358_v3 }
  0x12   :  { %153 = vmatpush.bf16.msra.mxu0 %v357_v4  ;;  %413 = vmatpush.bf16.msra.mxu1 %v357_v4 }
  0x13   :  { %414 = vmatpush.bf16.msra.mxu2 %v357_v4  ;;  %415 = vmatpush.bf16.msra.mxu3 %v357_v4 }
  0x16   :  { %154 = vmatpush.bf16.msra.mxu0 %v356_v5  ;;  %416 = vmatpush.bf16.msra.mxu1 %v356_v5 }
  0x17   :  { %417 = vmatpush.bf16.msra.mxu2 %v356_v5  ;;  %418 = vmatpush.bf16.msra.mxu3 %v356_v5  ;;  %v398_v5 = vld [vmem:[%s595_s3 + $0x28] sm:$0xff]  }
  0x1a   :  { %155 = vmatpush.bf16.msra.mxu0 %v355_v6  ;;  %419 = vmatpush.bf16.msra.mxu1 %v355_v6 }
  0x1b   :  { %420 = vmatpush.bf16.msra.mxu2 %v355_v6  ;;  %421 = vmatpush.bf16.msra.mxu3 %v355_v6  ;;  %v400_v6 = vld [vmem:[%s595_s3 + $0x38] sm:$0xff]  }
  0x1e   :  { %156 = vmatpush.bf16.msra.mxu0 %v354_v7  ;;  %422 = vmatpush.bf16.msra.mxu1 %v354_v7 }
  0x1f   :  { %423 = vmatpush.bf16.msra.mxu2 %v354_v7  ;;  %424 = vmatpush.bf16.msra.mxu3 %v354_v7 }
  0x21   :  { %157 = vmatmul.bf16.vlgmr.msra.gmra.mxu0 %v346_v8  ;;  %167 = vmatmul.bf16.vlgmr.msra.gmra.mxu1 %v348_v9 }
  0x22   :  { %177 = vmatmul.bf16.vlgmr.msra.gmra.mxu2 %v350_v10  ;;  %187 = vmatmul.bf16.vlgmr.msra.gmra.mxu3 %v352_v11  ;;  %v384_v11 = vunpack.c.l.bf16 %v398_v5 }
  0x31   :  { %162 = vmatmul.bf16.gmra.mxu0 %v347_v12  ;;  %172 = vmatmul.bf16.gmra.mxu1 %v349_v13  ;;  %v392_v12 = vunpack.c.l.bf16 %v400_v6 }
  0x32   :  { %182 = vmatmul.bf16.gmra.mxu2 %v351_v14  ;;  %192 = vmatmul.bf16.gmra.mxu3 %v353_v15  ;;  %v369_v15 = vunpack.c.h.bf16 %v394_v49 }
  0x9e   :  { %v158_v21 = vpop.f32.mrf.mxu0  ;;  %v168_v22 = vpop.f32.mrf.mxu1 }
  0x9f   :  { %v159_v23 = vadd.f32 %v508_v18, %v158_v21  ;;  %v169_v24 = vadd.f32 %v508_v18, %v168_v22 }
  0xa1   :  { %v230_v25 = vadd.f32 %v364_v19, %v159_v23  ;;  %v234_v26 = vadd.f32 %v372_v20, %v169_v24 }
  0xa3   :  { %v246_v29 = vmax.f32 %v230_v25, 0.0  ;;  %v250_v30 = vmax.f32 %v234_v26, 0.0 }
  0xa5   :  { %262 = vst [vmem:[%s596_s4] sm:$0xff] %v246_v29  ;;  %v178_v33 = vpop.f32.mrf.mxu2  ;;  %v188_v34 = vpop.f32.mrf.mxu3 }
  0xa6   :  { %266 = vst [vmem:[%s596_s4 + $0x20] sm:$0xff] %v250_v30  ;;  %v179_v37 = vadd.f32 %v508_v18, %v178_v33  ;;  %v189_v38 = vadd.f32 %v508_v18, %v188_v34  ;;  %v160_v39 = vpop.f32.mrf.mxu0  ;;  %v170_v40 = vpop.f32.mrf.mxu1  ;;  %v393_v33 = vunpack.c.h.bf16 %v400_v6 }
  0xa7   :  { %v161_v41 = vadd.f32 %v508_v18, %v160_v39  ;;  %v171_v42 = vadd.f32 %v508_v18, %v170_v40 }
  0xa8   :  { %v238_v43 = vadd.f32 %v380_v31, %v179_v37  ;;  %v242_v44 = vadd.f32 %v388_v32, %v189_v38  ;;  %v385_v32 = vunpack.c.h.bf16 %v398_v5 }
  0xa9   :  { %v231_v45 = vadd.f32 %v365_v35, %v161_v41  ;;  %v235_v46 = vadd.f32 %v373_v36, %v171_v42 }
  0xaa   :  { %v254_v47 = vmax.f32 %v238_v43, 0.0  ;;  %v258_v48 = vmax.f32 %v242_v44, 0.0 }
  0xab   :  { %v247_v51 = vmax.f32 %v231_v45, 0.0  ;;  %v251_v52 = vmax.f32 %v235_v46, 0.0 }
  0xac   :  { %270 = vst [vmem:[%s596_s4 + $0x40] sm:$0xff] %v254_v47 }
  0xad   :  { %274 = vst [vmem:[%s596_s4 + $0x60] sm:$0xff] %v258_v48  ;;  %v180_v55 = vpop.f32.mrf.mxu2  ;;  %v190_v56 = vpop.f32.mrf.mxu3 }
  0xae   :  { %263 = vst [vmem:[%s596_s4 + $0x8] sm:$0xff] %v247_v51  ;;  %v181_v59 = vadd.f32 %v508_v18, %v180_v55  ;;  %v191_v60 = vadd.f32 %v508_v18, %v190_v56  ;;  %v163_v61 = vpop.f32.mrf.mxu0  ;;  %v173_v62 = vpop.f32.mrf.mxu1 }
  0xaf   :  { %267 = vst [vmem:[%s596_s4 + $0x28] sm:$0xff] %v251_v52  ;;  %v164_v63 = vadd.f32 %v508_v18, %v163_v61  ;;  %v174_v0 = vadd.f32 %v508_v18, %v173_v62 }
  0xb0   :  { %v239_v1 = vadd.f32 %v381_v53, %v181_v59  ;;  %v243_v2 = vadd.f32 %v389_v54, %v191_v60 }
  0xb1   :  { %v232_v3 = vadd.f32 %v368_v57, %v164_v63  ;;  %v236_v4 = vadd.f32 %v376_v58, %v174_v0 }
  0xb2   :  { %v255_v7 = vmax.f32 %v239_v1, 0.0  ;;  %v259_v8 = vmax.f32 %v243_v2, 0.0 }
  0xb3   :  { %v248_v9 = vmax.f32 %v232_v3, 0.0  ;;  %v252_v10 = vmax.f32 %v236_v4, 0.0 }
  0xb4   :  { %271 = vst [vmem:[%s596_s4 + $0x48] sm:$0xff] %v255_v7 }
  0xb5   :  { %275 = vst [vmem:[%s596_s4 + $0x68] sm:$0xff] %v259_v8  ;;  %v183_v13 = vpop.f32.mrf.mxu2  ;;  %v193_v14 = vpop.f32.mrf.mxu3 }
  0xb6   :  { %264 = vst [vmem:[%s596_s4 + $0x10] sm:$0xff] %v248_v9  ;;  %v184_v17 = vadd.f32 %v508_v18, %v183_v13  ;;  %v194_v19 = vadd.f32 %v508_v18, %v193_v14  ;;  %v165_v20 = vpop.f32.mrf.mxu0  ;;  %v175_v21 = vpop.f32.mrf.mxu1 }
  0xb7   :  { %268 = vst [vmem:[%s596_s4 + $0x30] sm:$0xff] %v252_v10  ;;  %v166_v22 = vadd.f32 %v508_v18, %v165_v20  ;;  %v176_v23 = vadd.f32 %v508_v18, %v175_v21 }
  0xb8   :  { %v240_v24 = vadd.f32 %v384_v11, %v184_v17  ;;  %v244_v25 = vadd.f32 %v392_v12, %v194_v19 }
  0xb9   :  { %v233_v26 = vadd.f32 %v369_v15, %v166_v22  ;;  %v237_v27 = vadd.f32 %v377_v16, %v176_v23 }
  0xba   :  { %v256_v28 = vmax.f32 %v240_v24, 0.0  ;;  %v260_v29 = vmax.f32 %v244_v25, 0.0 }
  0xbb   :  { %v249_v30 = vmax.f32 %v233_v26, 0.0  ;;  %v253_v31 = vmax.f32 %v237_v27, 0.0 }
  0xbc   :  { %272 = vst [vmem:[%s596_s4 + $0x50] sm:$0xff] %v256_v28 }
  0xbd   :  { %276 = vst [vmem:[%s596_s4 + $0x70] sm:$0xff] %v260_v29  ;;  %v185_v34 = vpop.f32.mrf.mxu2  ;;  %v195_v35 = vpop.f32.mrf.mxu3 }
  0xbe   :  { %265 = vst [vmem:[%s596_s4 + $0x18] sm:$0xff] %v249_v30  ;;  %v186_v36 = vadd.f32 %v508_v18, %v185_v34  ;;  %v196_v37 = vadd.f32 %v508_v18, %v195_v35 }
  0xbf   :  { %269 = vst [vmem:[%s596_s4 + $0x38] sm:$0xff] %v253_v31 }
  0xc0   :  { %v241_v38 = vadd.f32 %v385_v32, %v186_v36  ;;  %v245_v39 = vadd.f32 %v393_v33, %v196_v37 }
  0xc2   :  { %v257_v40 = vmax.f32 %v241_v38, 0.0  ;;  %v261_v41 = vmax.f32 %v245_v39, 0.0 }
  0xc4   :  { %273 = vst [vmem:[%s596_s4 + $0x58] sm:$0xff] %v257_v40 }
  0xc5   :  { %277 = vst [vmem:[%s596_s4 + $0x78] sm:$0xff] %v261_v41 }

// kernel: bottleneck_forward.5
= control target key start
LH: loop header
LB: loop body
LE: loop exit
PB: predicated region body
PF: predicated region fallthrough
CT: control target
= control target key end

     0   :  { %s2933_s1 = inlined_call_operand.vmem [shape: bf16[3,384,128], index: 1, kind: input, shape index: {}]   ;;  %s2934_s0 = inlined_call_operand.vmem [shape: bf16[2,10,10,128], index: 0, kind: input, shape index: {}]   ;;  %s2935_s2 = inlined_call_operand.vmem [shape: f32[1,128], index: 2, kind: input, shape index: {}]   ;;  %s2936_s3 = inlined_call_operand.vmem [shape: bf16[2,64,128], index: 3, kind: output, shape index: {}]  }
   0x1   :  { %v1980_v0 = vld [vmem:[%s2933_s1 + $0x38] sm:$0xff]  ;;  %v1979_v1 = vld [vmem:[%s2933_s1 + $0x30] sm:$0xff]  ;;  %v1978_v2 = vld [vmem:[%s2933_s1 + $0x28] sm:$0xff] }
   0x2   :  { %594 = vmatpush.bf16.msra.mxu0 %v1980_v0  ;;  %2092 = vmatpush.bf16.msra.mxu1 %v1980_v0  ;;  %v1977_v3 = vld [vmem:[%s2933_s1 + $0x20] sm:$0xff]  ;;  %v1976_v4 = vld [vmem:[%s2933_s1 + $0x18] sm:$0xff]  ;;  %v1975_v5 = vld [vmem:[%s2933_s1 + $0x10] sm:$0xff] }
   0x3   :  { %2093 = vmatpush.bf16.msra.mxu2 %v1980_v0  ;;  %2094 = vmatpush.bf16.msra.mxu3 %v1980_v0  ;;  %v1974_v6 = vld [vmem:[%s2933_s1 + $0x8] sm:$0xff]  ;;  %v2161_v7 = vld [vmem:[%s2934_s0] sm:$0xf]  ;;  %v2175_v11 = vld [vmem:[%s2934_s0 + $0x50] sm:$0xf] }
   0x4   :  { %v20_v8 = vld [vmem:[%s2934_s0 + $0x8] sm:$0xf]  ;;  %v26_v9 = vld [vmem:[%s2934_s0 + $0x20] sm:$0xf]  ;;  %v40_v12 = vld [vmem:[%s2934_s0 + $0x58] sm:$0xf]  ;;  %v98_v15 = vunpack.c.l.b16 %v2161_v7  ;;  %v118_v20 = vunpack.c.l.b16 %v2175_v11 }
   0x5   :  { %v28_v10 = vld [vmem:[%s2934_s0 + $0x28] sm:$0xf]  ;;  %v46_v13 = vld [vmem:[%s2934_s0 + $0x70] sm:$0xf]  ;;  %v48_v14 = vld [vmem:[%s2934_s0 + $0x78] sm:$0xf]  ;;  %v2187_v16 = vunpack.c.l.b16 %v20_v8  ;;  %v2189_v17 = vunpack.c.l.b16 %v26_v9  ;;  %v2197_v21 = vunpack.c.l.b16 %v40_v12 }
   0x6   :  { %595 = vmatpush.bf16.msra.mxu0 %v1979_v1  ;;  %2095 = vmatpush.bf16.msra.mxu1 %v1979_v1  ;;  %v2191_v18 = vunpack.c.l.b16 %v28_v10  ;;  %v1973_v19 = vld [vmem:[%s2933_s1] sm:$0xff]  ;;  %v2199_v22 = vunpack.c.l.b16 %v46_v13  ;;  %v2201_v23 = vunpack.c.l.b16 %v48_v14  ;;  %v1996_v24 = vld [vmem:[%s2933_s1 + $0xb8] sm:$0xff]  ;;  %v1995_v32 = vld [vmem:[%s2933_s1 + $0xb0] sm:$0xff] }
   0x7   :  { %2096 = vmatpush.bf16.msra.mxu2 %v1979_v1  ;;  %2097 = vmatpush.bf16.msra.mxu3 %v1979_v1  ;;  %v2004_v25 = vld [vmem:[%s2933_s1 + $0xf8] sm:$0xff]  ;;  %v402_v26 = vpack.c.b16 %v2187_v16, %v98_v15  ;;  %v414_v28 = vpack.c.b16 %v2197_v21, %v118_v20  ;;  %v2003_v33 = vld [vmem:[%s2933_s1 + $0xf0] sm:$0xff]  ;;  %v19_v34 = vld [vmem:[%s2934_s0 + $0x4] sm:$0x1] }
   0x8   :  { %v2212_v27 = vpack.c.b16 %v2191_v18, %v2189_v17  ;;  %v2219_v29 = vpack.c.b16 %v2201_v23, %v2199_v22  ;;  %v1988_v30 = vld [vmem:[%s2933_s1 + $0x78] sm:$0xff]  ;;  %v21_v35 = vld [vmem:[%s2934_s0 + $0xc] sm:$0x1]  ;;  %v1987_v36 = vld [vmem:[%s2933_s1 + $0x70] sm:$0xff]  ;;  %v99_v38 = vunpack.c.l.b16 %v19_v34 }
   0x9   :  { %v2012_v31 = vld [vmem:[%s2933_s1 + $0x138] sm:$0xff]  ;;  %v2011_v37 = vld [vmem:[%s2933_s1 + $0x130] sm:$0xff]  ;;  %v101_v39 = vunpack.c.l.b16 %v21_v35  ;;  %v1994_v40 = vld [vmem:[%s2933_s1 + $0xa8] sm:$0xff] }
   0xa   :  { %596 = vmatpush.bf16.msra.mxu0 %v1978_v2  ;;  %2098 = vmatpush.bf16.msra.mxu1 %v1978_v2  ;;  %v2002_v41 = vld [vmem:[%s2933_s1 + $0xe8] sm:$0xff]  ;;  %v23_v42 = vld [vmem:[%s2934_s0 + $0x14] sm:$0x1]  ;;  %v22_v45 = vld [vmem:[%s2934_s0 + $0x10] sm:$0xf]  ;;  %v2286_v54 = vpack.c.b16 %v99_v38, %v98_v15 }
   0xb   :  { %2099 = vmatpush.bf16.msra.mxu2 %v1978_v2  ;;  %2100 = vmatpush.bf16.msra.mxu3 %v1978_v2  ;;  %v1986_v43 = vld [vmem:[%s2933_s1 + $0x68] sm:$0xff]  ;;  %v24_v46 = vld [vmem:[%s2934_s0 + $0x18] sm:$0xf]  ;;  %v30_v47 = vld [vmem:[%s2934_s0 + $0x30] sm:$0xf]  ;;  %v103_v50 = vunpack.c.l.b16 %v23_v42  ;;  %v2289_v55 = vpack.c.b16 %v101_v39, %v2187_v16  ;;  %v2297_v58 = vunpack.c.l.b16 %v22_v45 }
   0xc   :  { %v2010_v44 = vld [vmem:[%s2933_s1 + $0x128] sm:$0xff]  ;;  %v32_v48 = vld [vmem:[%s2934_s0 + $0x38] sm:$0xf]  ;;  %v42_v49 = vld [vmem:[%s2934_s0 + $0x60] sm:$0xf]  ;;  %v2299_v59 = vunpack.c.l.b16 %v24_v46  ;;  %v2301_v60 = vunpack.c.l.b16 %v30_v47  ;;  %v161_v14 = vshll.u32 %v2286_v54, 16 }
   0xd   :  { %v44_v51 = vld [vmem:[%s2934_s0 + $0x68] sm:$0xf]  ;;  %v50_v52 = vld [vmem:[%s2934_s0 + $0x80] sm:$0xf]  ;;  %v2303_v61 = vunpack.c.l.b16 %v32_v48  ;;  %v2305_v62 = vunpack.c.l.b16 %v42_v49  ;;  %v299_v7 = vrot.slane %v2289_v55, 1  ;;  %v168_v15 = vshll.u32 %v2289_v55, 16 }
   0xe   :  { %597 = vmatpush.bf16.msra.mxu0 %v1977_v3  ;;  %2101 = vmatpush.bf16.msra.mxu1 %v1977_v3  ;;  %v52_v53 = vld [vmem:[%s2934_s0 + $0x88] sm:$0xf]  ;;  %v1993_v56 = vld [vmem:[%s2933_s1 + $0xa0] sm:$0xff]  ;;  %v2307_v63 = vunpack.c.l.b16 %v44_v51  ;;  %v2309_v0 = vunpack.c.l.b16 %v50_v52  ;;  %v2329_v8 = vpack.c.b16 %v2299_v59, %v2297_v58  ;;  %v166_v34 = vshrl.u32 %v2289_v55, 16  ;;  %v2007_v38 = vld [vmem:[%s2933_s1 + $0x110] sm:$0xff] }
   0xf   :  { %2102 = vmatpush.bf16.msra.mxu2 %v1977_v3  ;;  %2103 = vmatpush.bf16.msra.mxu3 %v1977_v3  ;;  %v2001_v57 = vld [vmem:[%s2933_s1 + $0xe0] sm:$0xff]  ;;  %v2311_v1 = vunpack.c.l.b16 %v52_v53  ;;  %v2333_v9 = vpack.c.b16 %v2303_v61, %v2301_v60  ;;  %v170_v35 = vrot.slane %v168_v15, 1  ;;  %v1990_v42 = vld [vmem:[%s2933_s1 + $0x88] sm:$0xff]  ;;  %v298_v47 = vrot.slane %v2286_v54, 1  ;;  %v2028_v55 = vld [vmem:[%s2933_s1 + $0x1b8] sm:$0xff] }
  0x10   :  { %v1985_v2 = vld [vmem:[%s2933_s1 + $0x60] sm:$0xff]  ;;  %v2337_v12 = vpack.c.b16 %v2307_v63, %v2305_v62  ;;  %v1982_v49 = vld [vmem:[%s2933_s1 + $0x48] sm:$0xff]  ;;  %v2044_v15 = vld [vmem:[%s2933_s1 + $0x238] sm:$0xff] }
  0x11   :  { %v2009_v3 = vld [vmem:[%s2933_s1 + $0x120] sm:$0xff]  ;;  %v2341_v13 = vpack.c.b16 %v2311_v1, %v2309_v0  ;;  %v171_v46 = vor.u32 %v170_v35, %v166_v34  ;;  %v2019_v35 = vld [vmem:[%s2933_s1 + $0x170] sm:$0xff] }
  0x12   :  { %598 = vmatpush.bf16.msra.mxu0 %v1976_v4  ;;  %2104 = vmatpush.bf16.msra.mxu1 %v1976_v4  ;;  %v1989_v53 = vld [vmem:[%s2933_s1 + $0x80] sm:$0xff] }
  0x13   :  { %2105 = vmatpush.bf16.msra.mxu2 %v1976_v4  ;;  %2106 = vmatpush.bf16.msra.mxu3 %v1976_v4  ;;  %v140_v4 = vpack.c.b16 %v103_v50, %v2297_v58  ;;  %v2006_v50 = vld [vmem:[%s2933_s1 + $0x108] sm:$0xff] }
  0x15   :  { %v300_v10 = vrot.slane %v140_v4, 1  ;;  %v173_v39 = vshrl.u32 %v140_v4, 16 }
  0x16   :  { %599 = vmatpush.bf16.msra.mxu0 %v1975_v5  ;;  %2107 = vmatpush.bf16.msra.mxu1 %v1975_v5 }
  0x17   :  { %2108 = vmatpush.bf16.msra.mxu2 %v1975_v5  ;;  %2109 = vmatpush.bf16.msra.mxu3 %v1975_v5  ;;  %v1992_v5 = vld [vmem:[%s2933_s1 + $0x98] sm:$0xff] }
  0x1a   :  { %600 = vmatpush.bf16.msra.mxu0 %v1974_v6  ;;  %2110 = vmatpush.bf16.msra.mxu1 %v1974_v6 }
  0x1b   :  { %2111 = vmatpush.bf16.msra.mxu2 %v1974_v6  ;;  %2112 = vmatpush.bf16.msra.mxu3 %v1974_v6  ;;  %v2000_v6 = vld [vmem:[%s2933_s1 + $0xd8] sm:$0xff] }
  0x1e   :  { %601 = vmatpush.bf16.msra.mxu0 %v1973_v19  ;;  %2113 = vmatpush.bf16.msra.mxu1 %v1973_v19 }
  0x1f   :  { %2114 = vmatpush.bf16.msra.mxu2 %v1973_v19  ;;  %2115 = vmatpush.bf16.msra.mxu3 %v1973_v19  ;;  %v1984_v19 = vld [vmem:[%s2933_s1 + $0x58] sm:$0xff] }
  0x21   :  { %602 = vmatmul.bf16.vlgmr.msra.gmra.mxu0 %v402_v26  ;;  %612 = vmatmul.bf16.vlgmr.msra.gmra.mxu1 %v2212_v27  ;;  %v1991_v26 = vld [vmem:[%s2933_s1 + $0x90] sm:$0xff] }
  0x22   :  { %622 = vmatmul.bf16.vlgmr.msra.gmra.mxu2 %v414_v28  ;;  %632 = vmatmul.bf16.vlgmr.msra.gmra.mxu3 %v2219_v29  ;;  %v1999_v28 = vld [vmem:[%s2933_s1 + $0xd0] sm:$0xff] }
  0x23   :  { %692 = vmatpush.bf16.msrb.mxu2 %v1996_v24  ;;  %1002 = vmatpush.bf16.msrb.mxu3 %v2004_v25  ;;  %v2008_v24 = vld [vmem:[%s2933_s1 + $0x118] sm:$0xff]  ;;  %v175_v25 = vshll.u32 %v140_v4, 16 }
  0x24   :  { %643 = vmatpush.bf16.msrb.mxu1 %v1988_v30  ;;  %1051 = vmatpush.bf16.msrb.mxu0 %v2012_v31  ;;  %v2357_v30 = vunpack.c.l.b16 %v299_v7  ;;  %v2359_v31 = vunpack.c.l.b16 %v300_v10 }
  0x27   :  { %693 = vmatpush.bf16.msrb.mxu2 %v1995_v32  ;;  %1003 = vmatpush.bf16.msrb.mxu3 %v2003_v33  ;;  %v159_v32 = vshrl.u32 %v2286_v54, 16  ;;  %v163_v33 = vrot.slane %v161_v14, 1  ;;  %v1997_v54 = vld [vmem:[%s2933_s1 + $0xc0] sm:$0xff]  ;;  %v2020_v14 = vld [vmem:[%s2933_s1 + $0x178] sm:$0xff] }
  0x28   :  { %644 = vmatpush.bf16.msrb.mxu1 %v1987_v36  ;;  %1052 = vmatpush.bf16.msrb.mxu0 %v2011_v37  ;;  %v812_v36 = vpack.c.b16 %v2359_v31, %v2357_v30  ;;  %v1983_v37 = vld [vmem:[%s2933_s1 + $0x50] sm:$0xff] }
  0x29   :  { %v164_v45 = vor.u32 %v163_v33, %v159_v32  ;;  %v810_v32 = vpack.c.b16 %v2297_v58, %v2187_v16 }
  0x2b   :  { %694 = vmatpush.bf16.msrb.mxu2 %v1994_v40  ;;  %1004 = vmatpush.bf16.msrb.mxu3 %v2002_v41  ;;  %v177_v40 = vrot.slane %v175_v25, 1  ;;  %v25_v41 = vld [vmem:[%s2934_s0 + $0x1c] sm:$0x1] }
  0x2c   :  { %645 = vmatpush.bf16.msrb.mxu1 %v1986_v43  ;;  %1053 = vmatpush.bf16.msrb.mxu0 %v2010_v44  ;;  %v1998_v43 = vld [vmem:[%s2933_s1 + $0xc8] sm:$0xff]  ;;  %v27_v44 = vld [vmem:[%s2934_s0 + $0x24] sm:$0x1]  ;;  %v105_v48 = vunpack.c.l.b16 %v25_v41 }
  0x2d   :  { %v2394_v51 = vor.u32 %v177_v40, %v173_v39  ;;  %v107_v52 = vunpack.c.l.b16 %v27_v44  ;;  %v29_v40 = vld [vmem:[%s2934_s0 + $0x2c] sm:$0x1] }
  0x2e   :  { %v141_v4 = vpack.c.b16 %v105_v48, %v2299_v59  ;;  %v2026_v41 = vld [vmem:[%s2933_s1 + $0x1a8] sm:$0xff]  ;;  %v109_v48 = vunpack.c.l.b16 %v29_v40 }
  0x2f   :  { %695 = vmatpush.bf16.msrb.mxu2 %v1993_v56  ;;  %1005 = vmatpush.bf16.msrb.mxu3 %v2001_v57  ;;  %v2036_v56 = vld [vmem:[%s2933_s1 + $0x1f8] sm:$0xff]  ;;  %v322_v57 = vunpack.c.l.b16 %v164_v45  ;;  %v326_v7 = vunpack.c.l.b16 %v2394_v51  ;;  %v2417_v10 = vpack.c.b16 %v107_v52, %v2189_v17  ;;  %v2018_v44 = vld [vmem:[%s2933_s1 + $0x168] sm:$0xff] }
  0x30   :  { %646 = vmatpush.bf16.msrb.mxu1 %v1985_v2  ;;  %1054 = vmatpush.bf16.msrb.mxu0 %v2009_v3  ;;  %v324_v2 = vunpack.c.l.b16 %v171_v46  ;;  %v323_v3 = vunpack.c.l.b16 %v298_v47  ;;  %v2042_v45 = vld [vmem:[%s2933_s1 + $0x228] sm:$0xff]  ;;  %v301_v47 = vrot.slane %v141_v4, 1 }
  0x31   :  { %607 = vmatmul.bf16.gmra.mxu0 %v2329_v8  ;;  %617 = vmatmul.bf16.gmra.mxu1 %v2333_v9  ;;  %v189_v34 = vshll.u32 %v2417_v10, 16  ;;  %v187_v16 = vshrl.u32 %v2417_v10, 16 }
  0x32   :  { %627 = vmatmul.bf16.gmra.mxu2 %v2337_v12  ;;  %637 = vmatmul.bf16.gmra.mxu3 %v2341_v13  ;;  %v403_v25 = vpack.c.b16 %v324_v2, %v322_v57  ;;  %v811_v33 = vpack.c.b16 %v326_v7, %v324_v2  ;;  %v2460_v52 = vunpack.c.l.b16 %v301_v47 }
  0x33   :  { %696 = vmatpush.bf16.msrb.mxu2 %v1992_v5  ;;  %1006 = vmatpush.bf16.msrb.mxu3 %v2000_v6  ;;  %v1981_v5 = vld [vmem:[%s2933_s1 + $0x40] sm:$0xff]  ;;  %v191_v58 = vrot.slane %v189_v34, 1 }
  0x34   :  { %647 = vmatpush.bf16.msrb.mxu1 %v1984_v19  ;;  %1055 = vmatpush.bf16.msrb.mxu0 %v2008_v24  ;;  %v2005_v6 = vld [vmem:[%s2933_s1 + $0x100] sm:$0xff]  ;;  %v2027_v19 = vld [vmem:[%s2933_s1 + $0x1b0] sm:$0xff]  ;;  %v2470_v57 = vpack.c.b16 %v2460_v52, %v2359_v31 }
  0x35   :  { %v2035_v24 = vld [vmem:[%s2933_s1 + $0x1f0] sm:$0xff] }
  0x37   :  { %697 = vmatpush.bf16.msrb.mxu2 %v1991_v26  ;;  %1007 = vmatpush.bf16.msrb.mxu3 %v1999_v28  ;;  %v404_v26 = vpack.c.b16 %v2357_v30, %v323_v3  ;;  %v182_v28 = vshll.u32 %v141_v4, 16  ;;  %v813_v3 = vpack.c.b16 %v2189_v17, %v2299_v59  ;;  %v2025_v17 = vld [vmem:[%s2933_s1 + $0x1a0] sm:$0xff] }
  0x38   :  { %648 = vmatpush.bf16.msrb.mxu1 %v1983_v37  ;;  %1056 = vmatpush.bf16.msrb.mxu0 %v2007_v38  ;;  %v2043_v37 = vld [vmem:[%s2933_s1 + $0x230] sm:$0xff]  ;;  %v180_v38 = vshrl.u32 %v141_v4, 16  ;;  %v2033_v59 = vld [vmem:[%s2933_s1 + $0x1e0] sm:$0xff] }
  0x39   :  { %v184_v39 = vrot.slane %v182_v28, 1  ;;  %v2041_v28 = vld [vmem:[%s2933_s1 + $0x220] sm:$0xff] }
  0x3b   :  { %698 = vmatpush.bf16.msrb.mxu2 %v1990_v42  ;;  %1008 = vmatpush.bf16.msrb.mxu3 %v1998_v43  ;;  %v2034_v42 = vld [vmem:[%s2933_s1 + $0x1e8] sm:$0xff]  ;;  %v31_v43 = vld [vmem:[%s2934_s0 + $0x34] sm:$0x1]  ;;  %v185_v46 = vor.u32 %v184_v39, %v180_v38 }
  0x3c   :  { %649 = vmatpush.bf16.msrb.mxu1 %v1982_v49  ;;  %1057 = vmatpush.bf16.msrb.mxu0 %v2006_v50  ;;  %v192_v49 = vor.u32 %v191_v58, %v187_v16  ;;  %v111_v50 = vunpack.c.l.b16 %v31_v43 }
  0x3d   :  { %v328_v51 = vunpack.c.l.b16 %v185_v46  ;;  %v816_v46 = vpack.c.b16 %v2301_v60, %v2191_v18 }
  0x3f   :  { %699 = vmatpush.bf16.msrb.mxu2 %v1989_v53  ;;  %1009 = vmatpush.bf16.msrb.mxu3 %v1997_v54  ;;  %v143_v53 = vpack.c.b16 %v109_v48, %v2191_v18  ;;  %v330_v54 = vunpack.c.l.b16 %v192_v49  ;;  %v39_v49 = vld [vmem:[%s2934_s0 + $0x54] sm:$0x1] }
  0x40   :  { %650 = vmatpush.bf16.msrb.mxu1 %v1981_v5  ;;  %1058 = vmatpush.bf16.msrb.mxu0 %v2005_v6 }
  0x41   :  { %v196_v2 = vshll.u32 %v143_v53, 16  ;;  %v814_v4 = vpack.c.b16 %v330_v54, %v328_v51  ;;  %v194_v6 = vshrl.u32 %v143_v53, 16  ;;  %v303_v34 = vrot.slane %v143_v53, 1  ;;  %v41_v53 = vld [vmem:[%s2934_s0 + $0x5c] sm:$0x1] }
  0x42   :  { %700 = vmatmul.bf16.vlgmr.msrb.gmra.mxu2 %v404_v26  ;;  %1010 = vmatmul.bf16.vlgmr.msrb.gmra.mxu3 %v810_v32  ;;  %v35_v26 = vld [vmem:[%s2934_s0 + $0x44] sm:$0x1] }
  0x43   :  { %1374 = vmatpush.bf16.msra.mxu2 %v2028_v55  ;;  %1423 = vmatpush.bf16.msra.mxu3 %v2036_v56  ;;  %v2464_v55 = vpack.c.b16 %v111_v50, %v2301_v60  ;;  %v2466_v56 = vpack.c.b16 %v328_v51, %v326_v7  ;;  %v33_v7 = vld [vmem:[%s2934_s0 + $0x3c] sm:$0x1]  ;;  %v115_v39 = vunpack.c.l.b16 %v35_v26  ;;  %v2504_v40 = vunpack.c.l.b16 %v303_v34 }
  0x44   :  { %1100 = vmatpush.bf16.msra.mxu1 %v2020_v14  ;;  %1472 = vmatpush.bf16.msra.mxu0 %v2044_v15  ;;  %v198_v14 = vrot.slane %v196_v2, 1  ;;  %v2032_v2 = vld [vmem:[%s2933_s1 + $0x1d8] sm:$0xff] }
  0x45   :  { %651 = vmatmul.bf16.vlgmr.msrb.gmra.mxu1 %v403_v25  ;;  %1059 = vmatmul.bf16.vlgmr.msrb.gmra.mxu0 %v811_v33  ;;  %v203_v5 = vshll.u32 %v2464_v55, 16  ;;  %v201_v15 = vshrl.u32 %v2464_v55, 16  ;;  %v34_v25 = vld [vmem:[%s2934_s0 + $0x40] sm:$0xf]  ;;  %v302_v33 = vrot.slane %v2417_v10, 1 }
  0x46   :  { %v199_v32 = vor.u32 %v198_v14, %v194_v6  ;;  %v2500_v38 = vunpack.c.l.b16 %v34_v25  ;;  %v119_v6 = vunpack.c.l.b16 %v39_v49  ;;  %v2023_v49 = vld [vmem:[%s2933_s1 + $0x190] sm:$0xff] }
  0x47   :  { %1375 = vmatpush.bf16.msra.mxu2 %v2027_v19  ;;  %1424 = vmatpush.bf16.msra.mxu3 %v2035_v24  ;;  %v205_v19 = vrot.slane %v203_v5, 1  ;;  %v2017_v24 = vld [vmem:[%s2933_s1 + $0x160] sm:$0xff]  ;;  %v2502_v58 = vunpack.c.l.b16 %v302_v33  ;;  %v2040_v5 = vld [vmem:[%s2933_s1 + $0x218] sm:$0xff] }
  0x48   :  { %1101 = vmatpush.bf16.msra.mxu1 %v2019_v35  ;;  %1473 = vmatpush.bf16.msra.mxu0 %v2043_v37  ;;  %v113_v35 = vunpack.c.l.b16 %v33_v7  ;;  %v332_v16 = vunpack.c.l.b16 %v199_v32  ;;  %v2508_v43 = vpack.c.b16 %v115_v39, %v2500_v38  ;;  %v304_v7 = vrot.slane %v2464_v55, 1 }
  0x49   :  { %v206_v37 = vor.u32 %v205_v19, %v201_v15  ;;  %v121_v19 = vunpack.c.l.b16 %v41_v53  ;;  %v47_v53 = vld [vmem:[%s2934_s0 + $0x74] sm:$0x1] }
  0x4a   :  { %v2510_v10 = vpack.c.b16 %v332_v16, %v330_v54  ;;  %v217_v48 = vshll.u32 %v2508_v43, 16  ;;  %v215_v18 = vshrl.u32 %v2508_v43, 16  ;;  %v2024_v54 = vld [vmem:[%s2933_s1 + $0x198] sm:$0xff]  ;;  %v2548_v26 = vunpack.c.l.b16 %v304_v7 }
  0x4b   :  { %1376 = vmatpush.bf16.msra.mxu2 %v2026_v41  ;;  %1425 = vmatpush.bf16.msra.mxu3 %v2034_v42  ;;  %v145_v41 = vpack.c.b16 %v113_v35, %v2303_v61  ;;  %v334_v42 = vunpack.c.l.b16 %v206_v37  ;;  %v149_v32 = vpack.c.b16 %v121_v19, %v2197_v21 }
  0x4c   :  { %1102 = vmatpush.bf16.msra.mxu1 %v2018_v44  ;;  %1474 = vmatpush.bf16.msra.mxu0 %v2042_v45  ;;  %v2514_v44 = vpack.c.b16 %v2504_v40, %v2502_v58  ;;  %v219_v60 = vrot.slane %v217_v48, 1 }
  0x4d   :  { %v210_v45 = vshll.u32 %v145_v41, 16  ;;  %v817_v47 = vpack.c.b16 %v334_v42, %v332_v16  ;;  %v208_v50 = vshrl.u32 %v145_v41, 16  ;;  %v305_v15 = vrot.slane %v145_v41, 1 }
  0x4e   :  { %v238_v11 = vshll.u32 %v149_v32, 16 }
  0x4f   :  { %1377 = vmatpush.bf16.msra.mxu2 %v2025_v17  ;;  %1426 = vmatpush.bf16.msra.mxu3 %v2033_v59  ;;  %v212_v51 = vrot.slane %v210_v45, 1  ;;  %v2544_v17 = vor.u32 %v219_v60, %v215_v18  ;;  %v2039_v18 = vld [vmem:[%s2933_s1 + $0x210] sm:$0xff] }
  0x50   :  { %1103 = vmatpush.bf16.msra.mxu1 %v2017_v24  ;;  %1475 = vmatpush.bf16.msra.mxu0 %v2041_v28  ;;  %v148_v24 = vpack.c.b16 %v119_v6, %v118_v20  ;;  %v2550_v28 = vunpack.c.l.b16 %v305_v15  ;;  %v819_v20 = vpack.c.b16 %v2500_v38, %v2303_v61  ;;  %v127_v6 = vunpack.c.l.b16 %v47_v53  ;;  %v2014_v53 = vld [vmem:[%s2933_s1 + $0x148] sm:$0xff] }
  0x51   :  { %v213_v14 = vor.u32 %v212_v51, %v208_v50  ;;  %v2938_v33 = vunpack.c.l.b16 %v2544_v17  ;;  %v2031_v50 = vld [vmem:[%s2933_s1 + $0x1d0] sm:$0xff] }
  0x52   :  { %705 = vmatmul.bf16.gmra.mxu2 %v2470_v57  ;;  %1015 = vmatmul.bf16.gmra.mxu3 %v813_v3  ;;  %v2016_v3 = vld [vmem:[%s2933_s1 + $0x158] sm:$0xff]  ;;  %v231_v34 = vshll.u32 %v148_v24, 16  ;;  %v2561_v37 = vpack.c.b16 %v2550_v28, %v2548_v26  ;;  %v229_v41 = vshrl.u32 %v148_v24, 16  ;;  %v2015_v51 = vld [vmem:[%s2933_s1 + $0x150] sm:$0xff] }
  0x53   :  { %1378 = vmatpush.bf16.msra.mxu2 %v2024_v54  ;;  %1427 = vmatpush.bf16.msra.mxu3 %v2032_v2  ;;  %v336_v25 = vunpack.c.l.b16 %v213_v14  ;;  %v308_v2 = vrot.slane %v148_v24, 1 }
  0x54   :  { %1104 = vmatpush.bf16.msra.mxu1 %v2016_v3  ;;  %1476 = vmatpush.bf16.msra.mxu0 %v2040_v5  ;;  %v233_v45 = vrot.slane %v231_v34, 1  ;;  %v309_v3 = vrot.slane %v149_v32, 1  ;;  %v2593_v34 = vpack.c.b16 %v127_v6, %v2199_v22 }
  0x55   :  { %656 = vmatmul.bf16.gmra.mxu1 %v2466_v56  ;;  %1064 = vmatmul.bf16.gmra.mxu0 %v814_v4  ;;  %v43_v4 = vld [vmem:[%s2934_s0 + $0x64] sm:$0x1]  ;;  %v2557_v35 = vpack.c.b16 %v336_v25, %v334_v42  ;;  %v820_v39 = vpack.c.b16 %v2938_v33, %v336_v25  ;;  %v236_v42 = vshrl.u32 %v149_v32, 16  ;;  %v339_v15 = vunpack.c.l.b16 %v308_v2 }
  0x56   :  { %v123_v59 = vunpack.c.l.b16 %v43_v4  ;;  %v234_v60 = vor.u32 %v233_v45, %v229_v41  ;;  %v2589_v19 = vunpack.c.l.b16 %v309_v3 }
  0x57   :  { %1379 = vmatpush.bf16.msra.mxu2 %v2023_v49  ;;  %1428 = vmatpush.bf16.msra.mxu3 %v2031_v50 }
  0x58   :  { %v2555_v55 = vpack.c.b16 %v123_v59, %v2305_v62  ;;  %1105 = vmatpush.bf16.msra.mxu1 %v2015_v51  ;;  %1477 = vmatpush.bf16.msra.mxu0 %v2039_v18  ;;  %v338_v14 = vunpack.c.l.b16 %v234_v60  ;;  %v416_v24 = vpack.c.b16 %v2589_v19, %v339_v15  ;;  %v2038_v18 = vld [vmem:[%s2933_s1 + $0x208] sm:$0xff] }
  0x5a   :  { %v245_v16 = vshll.u32 %v2555_v55, 16  ;;  %v243_v61 = vshrl.u32 %v2555_v55, 16  ;;  %v310_v49 = vrot.slane %v2555_v55, 1 }
  0x5c   :  { %v247_v48 = vrot.slane %v245_v16, 1  ;;  %v259_v16 = vshll.u32 %v2593_v34, 16  ;;  %1106 = vmatpush.bf16.msra.mxu1 %v2014_v53  ;;  %1478 = vmatpush.bf16.msra.mxu0 %v2038_v18  ;;  %v2619_v3 = vunpack.c.l.b16 %v310_v49 }
  0x5e   :  { %v248_v5 = vor.u32 %v247_v48, %v243_v61  ;;  %v51_v61 = vld [vmem:[%s2934_s0 + $0x84] sm:$0x1] }
  0x60   :  { %v342_v25 = vunpack.c.l.b16 %v248_v5 }
  0x62   :  { %710 = vmatmul.bf16.gmra.mxu2 %v2514_v44  ;;  %1020 = vmatmul.bf16.gmra.mxu3 %v816_v46  ;;  %v240_v46 = vrot.slane %v238_v11, 1 }
  0x64   :  { %v241_v54 = vor.u32 %v240_v46, %v236_v42  ;;  %v257_v42 = vshrl.u32 %v2593_v34, 16  ;;  %v261_v46 = vrot.slane %v259_v16, 1  ;;  %v53_v16 = vld [vmem:[%s2934_s0 + $0x8c] sm:$0x1] }
  0x65   :  { %661 = vmatmul.bf16.gmra.mxu1 %v2510_v10  ;;  %1069 = vmatmul.bf16.gmra.mxu0 %v817_v47  ;;  %v45_v47 = vld [vmem:[%s2934_s0 + $0x6c] sm:$0x1] }
  0x66   :  { %v125_v4 = vunpack.c.l.b16 %v45_v47  ;;  %v340_v7 = vunpack.c.l.b16 %v241_v54  ;;  %v49_v47 = vld [vmem:[%s2934_s0 + $0x7c] sm:$0x1]  ;;  %v262_v60 = vor.u32 %v261_v46, %v257_v42  ;;  %v131_v54 = vunpack.c.l.b16 %v51_v61  ;;  %v2037_v61 = vld [vmem:[%s2933_s1 + $0x200] sm:$0xff] }
  0x67   :  { %v129_v51 = vunpack.c.l.b16 %v49_v47  ;;  %v312_v46 = vrot.slane %v2593_v34, 1  ;;  %1479 = vmatpush.bf16.msra.mxu0 %v2037_v61 }
  0x68   :  { %v151_v59 = vpack.c.b16 %v125_v4, %v2307_v63  ;;  %v415_v11 = vpack.c.b16 %v340_v7, %v338_v14  ;;  %v346_v5 = vunpack.c.l.b16 %v262_v60  ;;  %v2625_v6 = vpack.c.b16 %v131_v54, %v2309_v0 }
  0x69   :  { %v153_v55 = vpack.c.b16 %v129_v51, %v2201_v23  ;;  %v2663_v53 = vunpack.c.l.b16 %v312_v46 }
  0x6a   :  { %v252_v32 = vshll.u32 %v151_v59, 16  ;;  %v250_v41 = vshrl.u32 %v151_v59, 16  ;;  %v311_v50 = vrot.slane %v151_v59, 1  ;;  %v825_v59 = vpack.c.b16 %v2199_v22, %v2307_v63  ;;  %v2021_v22 = vld [vmem:[%s2933_s1 + $0x180] sm:$0xff] }
  0x6b   :  { %v266_v15 = vshll.u32 %v153_v55, 16  ;;  %v2029_v63 = vld [vmem:[%s2933_s1 + $0x1c0] sm:$0xff]  ;;  %v313_v47 = vrot.slane %v153_v55, 1 }
  0x6c   :  { %v254_v45 = vrot.slane %v252_v32, 1  ;;  %v2621_v4 = vunpack.c.l.b16 %v311_v50  ;;  %v264_v32 = vshrl.u32 %v153_v55, 16 }
  0x6d   :  { %v2665_v34 = vunpack.c.l.b16 %v313_v47 }
  0x6e   :  { %v255_v48 = vor.u32 %v254_v45, %v250_v41  ;;  %v54_v41 = vld [vmem:[%s2934_s0 + $0x90] sm:$0xf]  ;;  %v55_v45 = vld [vmem:[%s2934_s0 + $0x94] sm:$0x1] }
  0x6f   :  { %v2661_v49 = vunpack.c.l.b16 %v54_v41  ;;  %v135_v50 = vunpack.c.l.b16 %v55_v45  ;;  %v314_v45 = vrot.slane %v2625_v6, 1 }
  0x70   :  { %v344_v2 = vunpack.c.l.b16 %v255_v48 }
  0x71   :  { %v2669_v54 = vpack.c.b16 %v135_v50, %v2661_v49 }
  0x72   :  { %715 = vmatmul.bf16.gmra.mxu2 %v2561_v37  ;;  %1025 = vmatmul.bf16.gmra.mxu3 %v819_v20  ;;  %v822_v20 = vpack.c.b16 %v2305_v62, %v2197_v21  ;;  %v2022_v21 = vld [vmem:[%s2933_s1 + $0x188] sm:$0xff]  ;;  %v2627_v14 = vpack.c.b16 %v344_v2, %v342_v25 }
  0x73   :  { %v2030_v62 = vld [vmem:[%s2933_s1 + $0x1c8] sm:$0xff]  ;;  %1380 = vmatpush.bf16.msra.mxu2 %v2022_v21  ;;  %v133_v21 = vunpack.c.l.b16 %v53_v16 }
  0x74   :  { %1429 = vmatpush.bf16.msra.mxu3 %v2030_v62  ;;  %v2013_v62 = vld [vmem:[%s2933_s1 + $0x140] sm:$0xff] }
  0x75   :  { %666 = vmatmul.bf16.gmra.mxu1 %v2557_v35  ;;  %1074 = vmatmul.bf16.gmra.mxu0 %v820_v39  ;;  %v823_v39 = vpack.c.b16 %v342_v25, %v340_v7  ;;  %v2631_v7 = vpack.c.b16 %v2621_v4, %v2619_v3  ;;  %v271_v25 = vshrl.u32 %v2625_v6, 16  ;;  %v155_v18 = vpack.c.b16 %v133_v21, %v2311_v1 }
  0x76   :  { %1107 = vmatpush.bf16.msra.mxu1 %v2013_v62  ;;  %v2694_v21 = vunpack.c.l.b16 %v314_v45 }
  0x77   :  { %1381 = vmatpush.bf16.msra.mxu2 %v2021_v22 }
  0x78   :  { %1430 = vmatpush.bf16.msra.mxu3 %v2029_v63 }
  0x82   :  { %720 = vmatmul.bf16.gmra.mxu2 %v416_v24  ;;  %1030 = vmatmul.bf16.gmra.mxu3 %v822_v20  ;;  %v273_v24 = vshll.u32 %v2625_v6, 16  ;;  %v268_v20 = vrot.slane %v266_v15, 1 }
  0x84   :  { %v269_v42 = vor.u32 %v268_v20, %v264_v32  ;;  %v287_v20 = vshll.u32 %v2669_v54, 16 }
  0x85   :  { %671 = vmatmul.bf16.gmra.mxu1 %v415_v11  ;;  %1079 = vmatmul.bf16.gmra.mxu0 %v823_v39  ;;  %v826_v11 = vpack.c.b16 %v346_v5, %v344_v2  ;;  %v275_v39 = vrot.slane %v273_v24, 1  ;;  %v828_v24 = vpack.c.b16 %v2309_v0, %v2201_v23 }
  0x86   :  { %v348_v51 = vunpack.c.l.b16 %v269_v42  ;;  %v289_v16 = vrot.slane %v287_v20, 1  ;;  %v315_v42 = vrot.slane %v155_v18, 1 }
  0x87   :  { %v276_v48 = vor.u32 %v275_v39, %v271_v25  ;;  %v278_v25 = vshrl.u32 %v155_v18, 16 }
  0x88   :  { %v2673_v15 = vpack.c.b16 %v348_v51, %v346_v5  ;;  %v285_v5 = vshrl.u32 %v2669_v54, 16  ;;  %v2696_v62 = vunpack.c.l.b16 %v315_v42 }
  0x89   :  { %v350_v60 = vunpack.c.l.b16 %v276_v48 }
  0x8a   :  { %v2692_v46 = vor.u32 %v289_v16, %v285_v5  ;;  %v2709_v6 = vpack.c.b16 %v2696_v62, %v2694_v21 }
  0x8b   :  { %v829_v32 = vpack.c.b16 %v350_v60, %v348_v51 }
  0x8c   :  { %v2937_v61 = vunpack.c.l.b16 %v2692_v46 }
  0x92   :  { %725 = vmatmul.bf16.gmra.mxu2 %v2631_v7  ;;  %1035 = vmatmul.bf16.gmra.mxu3 %v825_v59  ;;  %v2677_v59 = vpack.c.b16 %v2665_v34, %v2663_v53 }
  0x95   :  { %676 = vmatmul.bf16.gmra.mxu1 %v2627_v14  ;;  %1084 = vmatmul.bf16.gmra.mxu0 %v826_v11  ;;  %v280_v11 = vshll.u32 %v155_v18, 16  ;;  %v831_v18 = vpack.c.b16 %v2661_v49, %v2311_v1 }
  0x97   :  { %v282_v39 = vrot.slane %v280_v11, 1 }
  0x99   :  { %v283_v0 = vor.u32 %v282_v39, %v278_v25 }
  0x9b   :  { %v352_v47 = vunpack.c.l.b16 %v283_v0 }
  0x9e   :  { %v603_v2 = vpop.f32.mrf.mxu0  ;;  %v2671_v55 = vpop.f32.mrf.mxu1 }
  0xa2   :  { %730 = vmatmul.bf16.gmra.mxu2 %v2677_v59  ;;  %1040 = vmatmul.bf16.gmra.mxu3 %v828_v24  ;;  %v2705_v24 = vpack.c.b16 %v352_v47, %v350_v60 }
  0xa5   :  { %681 = vmatmul.bf16.gmra.mxu1 %v2673_v15  ;;  %1089 = vmatmul.bf16.gmra.mxu0 %v829_v32  ;;  %v2685_v22 = vpop.f32.mrf.mxu2  ;;  %v2687_v63 = vpop.f32.mrf.mxu3  ;;  %v832_v32 = vpack.c.b16 %v2937_v61, %v352_v47 }
  0xa6   :  { %v605_v41 = vpop.f32.mrf.mxu0  ;;  %v2689_v23 = vpop.f32.mrf.mxu1 }
  0xad   :  { %v2699_v48 = vpop.f32.mrf.mxu2  ;;  %v2701_v50 = vpop.f32.mrf.mxu3 }
  0xae   :  { %v608_v51 = vpop.f32.mrf.mxu0  ;;  %v2703_v11 = vpop.f32.mrf.mxu1 }
  0xb2   :  { %735 = vmatmul.bf16.gmra.mxu2 %v2709_v6  ;;  %1045 = vmatmul.bf16.gmra.mxu3 %v831_v18 }
  0xb5   :  { %686 = vmatmul.bf16.gmra.mxu1 %v2705_v24  ;;  %1094 = vmatmul.bf16.gmra.mxu0 %v832_v32  ;;  %v2717_v20 = vpop.f32.mrf.mxu2  ;;  %v2719_v60 = vpop.f32.mrf.mxu3 }
  0xb6   :  { %v610_v25 = vpop.f32.mrf.mxu0  ;;  %v2721_v39 = vpop.f32.mrf.mxu1 }
  0xbd   :  { %v2723_v5 = vpop.f32.mrf.mxu2  ;;  %v2725_v16 = vpop.f32.mrf.mxu3 }
  0xbe   :  { %2939 = vst [vmem:[#allocation2_spill] sm:$0xff] %v2725_v16 }
  0xc2   :  { %v652_v1 = vpop.f32.mrf.mxu1  ;;  %v1060_v45 = vpop.f32.mrf.mxu0  ;;  %1382 = vmatmul.bf16.vlgmr.msra.gmra.mxu2 %v2329_v8  ;;  %1431 = vmatmul.bf16.vlgmr.msra.gmra.mxu3 %v2466_v56  ;;  %v815_v8 = vpack.c.b16 %v2502_v58, %v2460_v52  ;;  %v37_v52 = vld [vmem:[%s2934_s0 + $0x4c] sm:$0x1] }
  0xc3   :  { %v653_v0 = vadd.f32 %v652_v1, %v603_v2 }
  0xc5   :  { %1108 = vmatmul.bf16.vlgmr.msra.gmra.mxu1 %v812_v36  ;;  %1480 = vmatmul.bf16.vlgmr.msra.gmra.mxu0 %v2470_v57  ;;  %v701_v42 = vpop.f32.mrf.mxu2  ;;  %v1011_v18 = vpop.f32.mrf.mxu3 }
  0xc6   :  { %v2733_v47 = vadd.f32 %v701_v42, %v653_v0  ;;  %v2735_v32 = vadd.f32 %v1060_v45, %v1011_v18  ;;  %v117_v45 = vunpack.c.l.b16 %v37_v52 }
  0xca   :  { %v654_v61 = vpop.f32.mrf.mxu1  ;;  %v1062_v2 = vpop.f32.mrf.mxu0 }
  0xcb   :  { %v655_v33 = vadd.f32 %v654_v61, %v605_v41 }
  0xcd   :  { %v703_v1 = vpop.f32.mrf.mxu2  ;;  %v1013_v30 = vpop.f32.mrf.mxu3 }
  0xce   :  { %v2737_v16 = vadd.f32 %v703_v1, %v655_v33  ;;  %v2741_v31 = vadd.f32 %v1062_v2, %v1013_v30  ;;  %v36_v33 = vld [vmem:[%s2934_s0 + $0x48] sm:$0xf]  ;;  %v818_v30 = vpack.c.b16 %v2548_v26, %v2504_v40  ;;  %v306_v26 = vrot.slane %v2508_v43, 1 }
  0xd2   :  { %v657_v36 = vpop.f32.mrf.mxu1  ;;  %v1065_v57 = vpop.f32.mrf.mxu0  ;;  %1387 = vmatmul.bf16.gmra.mxu2 %v2212_v27  ;;  %1436 = vmatmul.bf16.gmra.mxu3 %v2510_v10  ;;  %v116_v27 = vunpack.c.l.b16 %v36_v33 }
  0xd3   :  { %v658_v56 = vadd.f32 %v657_v36, %v608_v51 }
  0xd5   :  { %1113 = vmatmul.bf16.gmra.mxu1 %v815_v8  ;;  %1485 = vmatmul.bf16.gmra.mxu0 %v2514_v44  ;;  %v706_v58 = vpop.f32.mrf.mxu2  ;;  %v1016_v61 = vpop.f32.mrf.mxu3  ;;  %v147_v44 = vpack.c.b16 %v117_v45, %v116_v27 }
  0xd6   :  { %v2752_v41 = vadd.f32 %v706_v58, %v658_v56  ;;  %v2754_v51 = vadd.f32 %v1065_v57, %v1016_v61 }
  0xd7   :  { %v224_v56 = vshll.u32 %v147_v44, 16 }
  0xd9   :  { %v226_v33 = vrot.slane %v224_v56, 1 }
  0xda   :  { %v659_v0 = vpop.f32.mrf.mxu1  ;;  %v1067_v42 = vpop.f32.mrf.mxu0 }
  0xdb   :  { %v660_v10 = vadd.f32 %v659_v0, %v610_v25  ;;  %v222_v25 = vshrl.u32 %v147_v44, 16 }
  0xdd   :  { %v708_v18 = vpop.f32.mrf.mxu2  ;;  %v1018_v1 = vpop.f32.mrf.mxu3 }
  0xde   :  { %v2756_v2 = vadd.f32 %v708_v18, %v660_v10  ;;  %v2760_v8 = vadd.f32 %v1067_v42, %v1018_v1  ;;  %v307_v10 = vrot.slane %v147_v44, 1  ;;  %v758_v18 = vunpack.c.l.b16 %v306_v26 }
  0xe0   :  { %v1166_v1 = vunpack.c.l.b16 %v307_v10  ;;  %v821_v56 = vpack.c.b16 %v758_v18, %v2550_v28 }
  0xe2   :  { %v662_v36 = vpop.f32.mrf.mxu1  ;;  %v1070_v58 = vpop.f32.mrf.mxu0  ;;  %1392 = vmatmul.bf16.gmra.mxu2 %v2333_v9  ;;  %1441 = vmatmul.bf16.gmra.mxu3 %v2557_v35 }
  0xe3   :  { %v663_v57 = vadd.f32 %v662_v36, %v2671_v55  ;;  %v227_v55 = vor.u32 %v226_v33, %v222_v25  ;;  %v2940_v25 = vunpack.c.l.b16 %v2544_v17  ;;  %v1220_v33 = vpack.c.b16 %v1166_v1, %v758_v18 }
  0xe5   :  { %1118 = vmatmul.bf16.gmra.mxu1 %v818_v30  ;;  %1490 = vmatmul.bf16.gmra.mxu0 %v2561_v37  ;;  %v711_v52 = vpop.f32.mrf.mxu2  ;;  %v1021_v40 = vpop.f32.mrf.mxu3  ;;  %v1165_v35 = vunpack.c.l.b16 %v227_v55 }
  0xe6   :  { %v2766_v61 = vadd.f32 %v711_v52, %v663_v57  ;;  %v2769_v0 = vadd.f32 %v1070_v58, %v1021_v40  ;;  %v1218_v57 = vpack.c.b16 %v116_v27, %v2500_v38 }
  0xe7   :  { %v1219_v44 = vpack.c.b16 %v1165_v35, %v2940_v25 }
  0xea   :  { %v664_v45 = vpop.f32.mrf.mxu1  ;;  %v1072_v9 = vpop.f32.mrf.mxu0 }
  0xeb   :  { %v665_v42 = vadd.f32 %v664_v45, %v2689_v23 }
  0xed   :  { %v713_v37 = vpop.f32.mrf.mxu2  ;;  %v1023_v36 = vpop.f32.mrf.mxu3 }
  0xee   :  { %v2772_v30 = vadd.f32 %v713_v37, %v665_v42  ;;  %v2776_v43 = vadd.f32 %v1072_v9, %v1023_v36 }
  0xf2   :  { %v667_v58 = vpop.f32.mrf.mxu1  ;;  %v1075_v52 = vpop.f32.mrf.mxu0  ;;  %1397 = vmatmul.bf16.gmra.mxu2 %v1218_v57  ;;  %1446 = vmatmul.bf16.gmra.mxu3 %v1219_v44 }
  0xf3   :  { %v668_v23 = vadd.f32 %v667_v58, %v2703_v11  ;;  %v824_v11 = vpack.c.b16 %v2619_v3, %v2589_v19 }
  0xf5   :  { %1123 = vmatmul.bf16.gmra.mxu1 %v821_v56  ;;  %1495 = vmatmul.bf16.gmra.mxu0 %v1220_v33  ;;  %v716_v40 = vpop.f32.mrf.mxu2  ;;  %v1026_v28 = vpop.f32.mrf.mxu3  ;;  %v56_v33 = vld [vmem:[%s2934_s0 + $0x98] sm:$0xf] }
  0xf6   :  { %v2781_v26 = vadd.f32 %v716_v40, %v668_v23  ;;  %v2783_v45 = vadd.f32 %v1075_v52, %v1026_v28 }
  0xfa   :  { %v669_v38 = vpop.f32.mrf.mxu1  ;;  %v1077_v55 = vpop.f32.mrf.mxu0 }
  0xfb   :  { %v670_v27 = vadd.f32 %v669_v38, %v2721_v39 }
  0xfd   :  { %v718_v17 = vpop.f32.mrf.mxu2  ;;  %v1028_v42 = vpop.f32.mrf.mxu3 }
  0xfe   :  { %v2786_v10 = vadd.f32 %v718_v17, %v670_v27  ;;  %v2790_v9 = vadd.f32 %v1077_v55, %v1028_v42  ;;  %v830_v42 = vpack.c.b16 %v2694_v21, %v2665_v34  ;;  %v316_v21 = vrot.slane %v2669_v54, 1 }
 0x102   :  { %v672_v18 = vpop.f32.mrf.mxu1  ;;  %v1080_v35 = vpop.f32.mrf.mxu0  ;;  %1402 = vmatmul.bf16.gmra.mxu2 %v2337_v12  ;;  %1451 = vmatmul.bf16.gmra.mxu3 %v2627_v14  ;;  %v827_v14 = vpack.c.b16 %v2663_v53, %v2621_v4  ;;  %v57_v4 = vld [vmem:[%s2934_s0 + $0x9c] sm:$0x1] }
 0x103   :  { %v673_v39 = vadd.f32 %v672_v18, %v2685_v22  ;;  %v137_v28 = vunpack.c.l.b16 %v57_v4 }
 0x105   :  { %1128 = vmatmul.bf16.gmra.mxu1 %v824_v11  ;;  %1500 = vmatmul.bf16.gmra.mxu0 %v2631_v7  ;;  %v721_v1 = vpop.f32.mrf.mxu2  ;;  %v1031_v36 = vpop.f32.mrf.mxu3 }
 0x106   :  { %v2796_v37 = vadd.f32 %v721_v1, %v673_v39  ;;  %v2798_v56 = vadd.f32 %v1080_v35, %v1031_v36 }
 0x10a   :  { %v674_v19 = vpop.f32.mrf.mxu1  ;;  %v1082_v3 = vpop.f32.mrf.mxu0 }
 0x10b   :  { %v675_v57 = vadd.f32 %v674_v19, %v2699_v48 }
 0x10d   :  { %v723_v58 = vpop.f32.mrf.mxu2  ;;  %v1033_v12 = vpop.f32.mrf.mxu3 }
 0x10e   :  { %v2801_v25 = vadd.f32 %v723_v58, %v675_v57  ;;  %v2805_v7 = vadd.f32 %v1082_v3, %v1033_v12 }
 0x112   :  { %v677_v22 = vpop.f32.mrf.mxu1  ;;  %v1085_v44 = vpop.f32.mrf.mxu0  ;;  %1407 = vmatmul.bf16.gmra.mxu2 %v2219_v29  ;;  %1456 = vmatmul.bf16.gmra.mxu3 %v2673_v15  ;;  %v136_v15 = vunpack.c.l.b16 %v56_v33 }
 0x113   :  { %v678_v48 = vadd.f32 %v677_v22, %v2717_v20  ;;  %v760_v22 = vunpack.c.l.b16 %v316_v21 }
 0x114   :  { %v157_v38 = vpack.c.b16 %v137_v28, %v136_v15 }
 0x115   :  { %1133 = vmatmul.bf16.gmra.mxu1 %v827_v14  ;;  %1505 = vmatmul.bf16.gmra.mxu0 %v2677_v59  ;;  %v726_v53 = vpop.f32.mrf.mxu2  ;;  %v1036_v52 = vpop.f32.mrf.mxu3  ;;  %v833_v4 = vpack.c.b16 %v760_v22, %v2696_v62 }
 0x116   :  { %v2817_v23 = vadd.f32 %v726_v53, %v678_v48  ;;  %v2819_v40 = vadd.f32 %v1085_v44, %v1036_v52  ;;  %v294_v35 = vshll.u32 %v157_v38, 16  ;;  %v317_v14 = vrot.slane %v157_v38, 1 }
 0x117   :  { %v1221_v53 = vpack.c.b16 %v136_v15, %v2661_v49 }
 0x118   :  { %v296_v1 = vrot.slane %v294_v35, 1  ;;  %v1168_v44 = vunpack.c.l.b16 %v317_v14 }
 0x11a   :  { %v679_v29 = vpop.f32.mrf.mxu1  ;;  %v1087_v59 = vpop.f32.mrf.mxu0 }
 0x11b   :  { %v680_v20 = vadd.f32 %v679_v29, %v2723_v5  ;;  %v292_v5 = vshrl.u32 %v157_v38, 16  ;;  %v2941_v29 = vunpack.c.l.b16 %v2692_v46  ;;  %v2854_v46 = vld [vmem:[%s2935_s2] ss:$0 sm:$0xff] }
 0x11d   :  { %v728_v27 = vpop.f32.mrf.mxu2  ;;  %v1038_v17 = vpop.f32.mrf.mxu3  ;;  %v297_v12 = vor.u32 %v296_v1, %v292_v5 }
 0x11e   :  { %v2822_v55 = vadd.f32 %v728_v27, %v680_v20  ;;  %v2826_v11 = vadd.f32 %v1087_v59, %v1038_v17  ;;  %v1223_v59 = vpack.c.b16 %v1168_v44, %v760_v22 }
 0x122   :  { %v682_v18 = vpop.f32.mrf.mxu1  ;;  %v1090_v39 = vpop.f32.mrf.mxu0  ;;  %1412 = vmatmul.bf16.gmra.mxu2 %v2341_v13  ;;  %1461 = vmatmul.bf16.gmra.mxu3 %v2705_v24  ;;  %v1167_v24 = vunpack.c.l.b16 %v297_v12 }
 0x123   :  { %v683_v36 = vadd.f32 %v682_v18, %v2687_v63 }
 0x124   :  { %v1222_v28 = vpack.c.b16 %v1167_v24, %v2941_v29 }
 0x125   :  { %1138 = vmatmul.bf16.gmra.mxu1 %v830_v42  ;;  %1510 = vmatmul.bf16.gmra.mxu0 %v2709_v6  ;;  %v731_v19 = vpop.f32.mrf.mxu2  ;;  %v1041_v34 = vpop.f32.mrf.mxu3  ;;  %v2942_v42 = vld [vmem:[#allocation2_spill] sm:$0xff] }
 0x126   :  { %v2832_v3 = vadd.f32 %v731_v19, %v683_v36  ;;  %v2835_v57 = vadd.f32 %v1090_v39, %v1041_v34  ;;  %v741_v36 = vadd.f32 %v2854_v46, %v2733_v47 }
 0x12a   :  { %v684_v58 = vpop.f32.mrf.mxu1  ;;  %v1092_v13 = vpop.f32.mrf.mxu0 }
 0x12b   :  { %v685_v6 = vadd.f32 %v684_v58, %v2701_v50 }
 0x12d   :  { %v733_v48 = vpop.f32.mrf.mxu2  ;;  %v1043_v63 = vpop.f32.mrf.mxu3 }
 0x12e   :  { %v2838_v33 = vadd.f32 %v733_v48, %v685_v6  ;;  %v2842_v54 = vadd.f32 %v1092_v13, %v1043_v63  ;;  %v742_v13 = vadd.f32 %v2854_v46, %v2737_v16 }
 0x132   :  { %v687_v52 = vpop.f32.mrf.mxu1  ;;  %v1095_v38 = vpop.f32.mrf.mxu0  ;;  %1417 = vmatmul.bf16.gmra.mxu2 %v1221_v53  ;;  %1466 = vmatmul.bf16.gmra.mxu3 %v1222_v28 }
 0x133   :  { %v688_v50 = vadd.f32 %v687_v52, %v2719_v60 }
 0x135   :  { %1143 = vmatmul.bf16.gmra.mxu1 %v833_v4  ;;  %1515 = vmatmul.bf16.gmra.mxu0 %v1223_v59  ;;  %v736_v20 = vpop.f32.mrf.mxu2  ;;  %v1046_v62 = vpop.f32.mrf.mxu3 }
 0x136   :  { %v2847_v27 = vadd.f32 %v736_v20, %v688_v50  ;;  %v2849_v17 = vadd.f32 %v1095_v38, %v1046_v62 }
 0x13a   :  { %v689_v49 = vpop.f32.mrf.mxu1  ;;  %v1097_v15 = vpop.f32.mrf.mxu0 }
 0x13b   :  { %v690_v18 = vadd.f32 %v689_v49, %v2942_v42  ;;  %v744_v42 = vadd.f32 %v2854_v46, %v2756_v2 }
 0x13d   :  { %v738_v35 = vpop.f32.mrf.mxu2  ;;  %v1048_v5 = vpop.f32.mrf.mxu3 }
 0x13e   :  { %v2857_v39 = vadd.f32 %v738_v35, %v690_v18  ;;  %v2859_v60 = vadd.f32 %v1097_v15, %v1048_v5 }
 0x142   :  { %v1109_v1 = vpop.f32.mrf.mxu1  ;;  %v1481_v34 = vpop.f32.mrf.mxu0 }
 0x143   :  { %v1110_v19 = vadd.f32 %v1109_v1, %v2735_v32  ;;  %v743_v32 = vadd.f32 %v2854_v46, %v2752_v41 }
 0x145   :  { %v1149_v21 = vadd.f32 %v1110_v19, %v741_v36  ;;  %v1383_v58 = vpop.f32.mrf.mxu2  ;;  %v1432_v12 = vpop.f32.mrf.mxu3 }
 0x146   :  { %v1433_v44 = vadd.f32 %v1432_v12, %v1383_v58 }
 0x148   :  { %v1482_v48 = vadd.f32 %v1481_v34, %v1433_v44 }
 0x14a   :  { %v1111_v14 = vpop.f32.mrf.mxu1  ;;  %v1483_v24 = vpop.f32.mrf.mxu0  ;;  %v1521_v28 = vadd.f32 %v1482_v48, %v1149_v21  ;;  %v745_v21 = vadd.f32 %v2854_v46, %v2766_v61 }
 0x14b   :  { %v1112_v22 = vadd.f32 %v1111_v14, %v2741_v31 }
 0x14c   :  { %v1537_v50 = vmax.f32 %v1521_v28, 0.0 }
 0x14d   :  { %v1150_v6 = vadd.f32 %v1112_v22, %v742_v13  ;;  %v1385_v63 = vpop.f32.mrf.mxu2  ;;  %v1434_v4 = vpop.f32.mrf.mxu3 }
 0x14e   :  { %v1435_v53 = vadd.f32 %v1434_v4, %v1385_v63  ;;  %v746_v4 = vadd.f32 %v2854_v46, %v2772_v30 }
 0x150   :  { %v1484_v59 = vadd.f32 %v1483_v24, %v1435_v53 }
 0x152   :  { %v1114_v47 = vpop.f32.mrf.mxu1  ;;  %v1486_v29 = vpop.f32.mrf.mxu0  ;;  %v1522_v16 = vadd.f32 %v1484_v59, %v1150_v6 }
 0x153   :  { %v1115_v52 = vadd.f32 %v1114_v47, %v2754_v51 }
 0x154   :  { %v1538_v31 = vmax.f32 %v1522_v16, 0.0 }
 0x155   :  { %v1151_v38 = vadd.f32 %v1115_v52, %v743_v32  ;;  %v1388_v20 = vpop.f32.mrf.mxu2  ;;  %v1437_v62 = vpop.f32.mrf.mxu3 }
 0x156   :  { %v2048_v49 = vpack.c.bf16 %v1538_v31, %v1537_v50  ;;  %v1438_v41 = vadd.f32 %v1437_v62, %v1388_v20 }
 0x158   :  { %2049 = vst [vmem:[%s2936_s3] sm:$0xff] %v2048_v49   ;;  %v1487_v5 = vadd.f32 %v1486_v29, %v1438_v41  ;;  %v748_v41 = vadd.f32 %v2854_v46, %v2786_v10 }
 0x15a   :  { %v1116_v15 = vpop.f32.mrf.mxu1  ;;  %v1488_v35 = vpop.f32.mrf.mxu0  ;;  %v1523_v12 = vadd.f32 %v1487_v5, %v1151_v38  ;;  %v747_v38 = vadd.f32 %v2854_v46, %v2781_v26 }
 0x15b   :  { %v1117_v18 = vadd.f32 %v1116_v15, %v2760_v8 }
 0x15c   :  { %v1539_v22 = vmax.f32 %v1523_v12, 0.0 }
 0x15d   :  { %v1152_v51 = vadd.f32 %v1117_v18, %v744_v42  ;;  %v1390_v1 = vpop.f32.mrf.mxu2  ;;  %v1439_v36 = vpop.f32.mrf.mxu3 }
 0x15e   :  { %v1440_v19 = vadd.f32 %v1439_v36, %v1390_v1 }
 0x160   :  { %v1489_v8 = vadd.f32 %v1488_v35, %v1440_v19 }
 0x162   :  { %v1119_v34 = vpop.f32.mrf.mxu1  ;;  %v1491_v2 = vpop.f32.mrf.mxu0  ;;  %v1524_v13 = vadd.f32 %v1489_v8, %v1152_v51 }
 0x163   :  { %v1120_v58 = vadd.f32 %v1119_v34, %v2769_v0 }
 0x164   :  { %v1540_v24 = vmax.f32 %v1524_v13, 0.0 }
 0x165   :  { %v1153_v14 = vadd.f32 %v1120_v58, %v745_v21  ;;  %v1393_v44 = vpop.f32.mrf.mxu2  ;;  %v1442_v6 = vpop.f32.mrf.mxu3  ;;  %v749_v58 = vadd.f32 %v2854_v46, %v2796_v37 }
 0x166   :  { %v2053_v48 = vpack.c.bf16 %v1540_v24, %v1539_v22  ;;  %v1443_v61 = vadd.f32 %v1442_v6, %v1393_v44 }
 0x168   :  { %2085 = vst [vmem:[%s2936_s3 + $0x8] sm:$0xff] %v2053_v48   ;;  %v1492_v32 = vadd.f32 %v1491_v2, %v1443_v61 }
 0x16a   :  { %v1121_v63 = vpop.f32.mrf.mxu1  ;;  %v1493_v47 = vpop.f32.mrf.mxu0  ;;  %v1525_v50 = vadd.f32 %v1492_v32, %v1153_v14 }
 0x16b   :  { %v1122_v53 = vadd.f32 %v1121_v63, %v2776_v43  ;;  %v750_v63 = vadd.f32 %v2854_v46, %v2801_v25 }
 0x16c   :  { %v1541_v62 = vmax.f32 %v1525_v50, 0.0 }
 0x16d   :  { %v1154_v0 = vadd.f32 %v1122_v53, %v746_v4  ;;  %v1395_v52 = vpop.f32.mrf.mxu2  ;;  %v1444_v29 = vpop.f32.mrf.mxu3 }
 0x16e   :  { %v1445_v28 = vadd.f32 %v1444_v29, %v1395_v52  ;;  %v751_v29 = vadd.f32 %v2854_v46, %v2817_v23 }
 0x170   :  { %v1494_v43 = vadd.f32 %v1493_v47, %v1445_v28 }
 0x172   :  { %v1124_v59 = vpop.f32.mrf.mxu1  ;;  %v1496_v30 = vpop.f32.mrf.mxu0  ;;  %v1526_v20 = vadd.f32 %v1494_v43, %v1154_v0 }
 0x173   :  { %v1125_v16 = vadd.f32 %v1124_v59, %v2783_v45 }
 0x174   :  { %v1542_v49 = vmax.f32 %v1526_v20, 0.0 }
 0x175   :  { %v1155_v31 = vadd.f32 %v1125_v16, %v747_v38  ;;  %v1398_v15 = vpop.f32.mrf.mxu2  ;;  %v1447_v42 = vpop.f32.mrf.mxu3 }
 0x176   :  { %v2058_v18 = vpack.c.bf16 %v1542_v49, %v1541_v62  ;;  %v1448_v26 = vadd.f32 %v1447_v42, %v1398_v15  ;;  %v752_v49 = vadd.f32 %v2854_v46, %v2822_v55 }
 0x178   :  { %2086 = vst [vmem:[%s2936_s3 + $0x10] sm:$0xff] %v2058_v18   ;;  %v1497_v1 = vadd.f32 %v1496_v30, %v1448_v26  ;;  %v753_v26 = vadd.f32 %v2854_v46, %v2832_v3 }
 0x17a   :  { %v1126_v35 = vpop.f32.mrf.mxu1  ;;  %v1498_v5 = vpop.f32.mrf.mxu0  ;;  %v1527_v12 = vadd.f32 %v1497_v1, %v1155_v31 }
 0x17b   :  { %v1127_v51 = vadd.f32 %v1126_v35, %v2790_v9 }
 0x17c   :  { %v1543_v13 = vmax.f32 %v1527_v12, 0.0 }
 0x17d   :  { %v1156_v45 = vadd.f32 %v1127_v51, %v748_v41  ;;  %v1400_v36 = vpop.f32.mrf.mxu2  ;;  %v1449_v19 = vpop.f32.mrf.mxu3 }
 0x17e   :  { %v1450_v34 = vadd.f32 %v1449_v19, %v1400_v36 }
 0x180   :  { %v1499_v9 = vadd.f32 %v1498_v5, %v1450_v34 }
 0x182   :  { %v1129_v21 = vpop.f32.mrf.mxu1  ;;  %v1501_v10 = vpop.f32.mrf.mxu0  ;;  %v1528_v14 = vadd.f32 %v1499_v9, %v1156_v45  ;;  %v754_v9 = vadd.f32 %v2854_v46, %v2838_v33 }
 0x183   :  { %v1130_v2 = vadd.f32 %v1129_v21, %v2798_v56 }
 0x184   :  { %v1544_v22 = vmax.f32 %v1528_v14, 0.0 }
 0x185   :  { %v1157_v8 = vadd.f32 %v1130_v2, %v749_v58  ;;  %v1403_v24 = vpop.f32.mrf.mxu2  ;;  %v1452_v44 = vpop.f32.mrf.mxu3 }
 0x186   :  { %v2063_v6 = vpack.c.bf16 %v1544_v22, %v1543_v13  ;;  %v1453_v37 = vadd.f32 %v1452_v44, %v1403_v24 }
 0x188   :  { %2087 = vst [vmem:[%s2936_s3 + $0x18] sm:$0xff] %v2063_v6   ;;  %v1502_v47 = vadd.f32 %v1501_v10, %v1453_v37 }
 0x18a   :  { %v1131_v48 = vpop.f32.mrf.mxu1  ;;  %v1503_v53 = vpop.f32.mrf.mxu0  ;;  %v1529_v59 = vadd.f32 %v1502_v47, %v1157_v8 }
 0x18b   :  { %v1132_v4 = vadd.f32 %v1131_v48, %v2805_v7  ;;  %v755_v48 = vadd.f32 %v2854_v46, %v2847_v27 }
 0x18c   :  { %v1545_v30 = vmax.f32 %v1529_v59, 0.0 }
 0x18d   :  { %v1158_v56 = vadd.f32 %v1132_v4, %v750_v63  ;;  %v1405_v61 = vpop.f32.mrf.mxu2  ;;  %v1454_v0 = vpop.f32.mrf.mxu3 }
 0x18e   :  { %v1455_v32 = vadd.f32 %v1454_v0, %v1405_v61 }
 0x190   :  { %v1504_v7 = vadd.f32 %v1503_v53, %v1455_v32 }
 0x192   :  { %v1134_v52 = vpop.f32.mrf.mxu1  ;;  %v1506_v25 = vpop.f32.mrf.mxu0  ;;  %v1530_v16 = vadd.f32 %v1504_v7, %v1158_v56 }
 0x193   :  { %v1135_v28 = vadd.f32 %v1134_v52, %v2819_v40 }
 0x194   :  { %v1546_v50 = vmax.f32 %v1530_v16, 0.0 }
 0x195   :  { %v1159_v38 = vadd.f32 %v1135_v28, %v751_v29  ;;  %v1408_v43 = vpop.f32.mrf.mxu2  ;;  %v1457_v31 = vpop.f32.mrf.mxu3  ;;  %v756_v29 = vadd.f32 %v2854_v46, %v2857_v39 }
 0x196   :  { %v2068_v20 = vpack.c.bf16 %v1546_v50, %v1545_v30  ;;  %v1458_v23 = vadd.f32 %v1457_v31, %v1408_v43 }
 0x198   :  { %2088 = vst [vmem:[%s2936_s3 + $0x20] sm:$0xff] %v2068_v20   ;;  %v1507_v18 = vadd.f32 %v1506_v25, %v1458_v23 }
 0x19a   :  { %v1136_v62 = vpop.f32.mrf.mxu1  ;;  %v1508_v42 = vpop.f32.mrf.mxu0  ;;  %v1531_v55 = vadd.f32 %v1507_v18, %v1159_v38 }
 0x19b   :  { %v1137_v15 = vadd.f32 %v1136_v62, %v2826_v11 }
 0x19c   :  { %v1547_v34 = vmax.f32 %v1531_v55, 0.0 }
 0x19d   :  { %v1160_v40 = vadd.f32 %v1137_v15, %v752_v49  ;;  %v1410_v35 = vpop.f32.mrf.mxu2  ;;  %v1459_v41 = vpop.f32.mrf.mxu3 }
 0x19e   :  { %v1460_v51 = vadd.f32 %v1459_v41, %v1410_v35 }
 0x1a0   :  { %v1509_v1 = vadd.f32 %v1508_v42, %v1460_v51 }
 0x1a2   :  { %v1139_v5 = vpop.f32.mrf.mxu1  ;;  %v1511_v36 = vpop.f32.mrf.mxu0  ;;  %v1532_v19 = vadd.f32 %v1509_v1, %v1160_v40 }
 0x1a3   :  { %v1140_v45 = vadd.f32 %v1139_v5, %v2835_v57 }
 0x1a4   :  { %v1548_v21 = vmax.f32 %v1532_v19, 0.0 }
 0x1a5   :  { %v1161_v11 = vadd.f32 %v1140_v45, %v753_v26  ;;  %v1413_v58 = vpop.f32.mrf.mxu2  ;;  %v1462_v2 = vpop.f32.mrf.mxu3 }
 0x1a6   :  { %v2073_v10 = vpack.c.bf16 %v1548_v21, %v1547_v34  ;;  %v1463_v3 = vadd.f32 %v1462_v2, %v1413_v58 }
 0x1a8   :  { %2089 = vst [vmem:[%s2936_s3 + $0x28] sm:$0xff] %v2073_v10   ;;  %v1512_v13 = vadd.f32 %v1511_v36, %v1463_v3 }
 0x1aa   :  { %v1141_v12 = vpop.f32.mrf.mxu1  ;;  %v1513_v14 = vpop.f32.mrf.mxu0  ;;  %v1533_v33 = vadd.f32 %v1512_v13, %v1161_v11 }
 0x1ab   :  { %v1142_v8 = vadd.f32 %v1141_v12, %v2842_v54 }
 0x1ac   :  { %v1549_v37 = vmax.f32 %v1533_v33, 0.0 }
 0x1ad   :  { %v1162_v57 = vadd.f32 %v1142_v8, %v754_v9  ;;  %v1415_v22 = vpop.f32.mrf.mxu2  ;;  %v1464_v24 = vpop.f32.mrf.mxu3 }
 0x1ae   :  { %v1465_v44 = vadd.f32 %v1464_v24, %v1415_v22 }
 0x1b0   :  { %v1514_v4 = vadd.f32 %v1513_v14, %v1465_v44 }
 0x1b2   :  { %v1144_v6 = vpop.f32.mrf.mxu1  ;;  %v1534_v53 = vadd.f32 %v1514_v4, %v1162_v57  ;;  %v1516_v61 = vpop.f32.mrf.mxu0 }
 0x1b3   :  { %v1145_v63 = vadd.f32 %v1144_v6, %v2849_v17 }
 0x1b4   :  { %v1550_v56 = vmax.f32 %v1534_v53, 0.0 }
 0x1b5   :  { %v1163_v54 = vadd.f32 %v1145_v63, %v755_v48  ;;  %v1418_v47 = vpop.f32.mrf.mxu2  ;;  %v1467_v0 = vpop.f32.mrf.mxu3 }
 0x1b6   :  { %v2078_v32 = vpack.c.bf16 %v1550_v56, %v1549_v37  ;;  %v1468_v27 = vadd.f32 %v1467_v0, %v1418_v47 }
 0x1b8   :  { %2090 = vst [vmem:[%s2936_s3 + $0x30] sm:$0xff] %v2078_v32   ;;  %v1517_v25 = vadd.f32 %v1516_v61, %v1468_v27 }
 0x1ba   :  { %v1146_v52 = vpop.f32.mrf.mxu1  ;;  %v1518_v16 = vpop.f32.mrf.mxu0  ;;  %v1535_v30 = vadd.f32 %v1517_v25, %v1163_v54 }
 0x1bb   :  { %v1147_v28 = vadd.f32 %v1146_v52, %v2859_v60 }
 0x1bc   :  { %v1551_v31 = vmax.f32 %v1535_v30, 0.0 }
 0x1bd   :  { %v1164_v17 = vadd.f32 %v1147_v28, %v756_v29  ;;  %v1420_v59 = vpop.f32.mrf.mxu2  ;;  %v1469_v7 = vpop.f32.mrf.mxu3 }
 0x1be   :  { %v1470_v38 = vadd.f32 %v1469_v7, %v1420_v59 }
 0x1c0   :  { %v1519_v50 = vadd.f32 %v1518_v16, %v1470_v38 }
 0x1c2   :  { %v1536_v43 = vadd.f32 %v1519_v50, %v1164_v17 }
 0x1c4   :  { %v1552_v20 = vmax.f32 %v1536_v43, 0.0 }
 0x1c6   :  { %v2083_v62 = vpack.c.bf16 %v1552_v20, %v1551_v31 }
 0x1c8   :  { %2091 = vst [vmem:[%s2936_s3 + $0x38] sm:$0xff] %v2083_v62  }

</bundles_post_ra>
